<compile_context>
chip_gen: v5e
topology: v5e:2x2
jax: 0.10.0
libtpu: 0.0.40
codegen_flags: <defaults>
</compile_context>

<pallas_src>
import math

import jax
import jax.numpy as jnp
from jax.experimental import pallas as pl
from jax.experimental.pallas import tpu as pltpu

# Small hyper-parameters consistent with TransformerModel(ntoken, ninp, nhead, nhid, nlayers)
NTOKEN = 16
NINP = 32      # E
NHEAD = 4
NHID = 64      # F
NLAYERS = 2
LN_EPS = 1e-5

_HI = jax.lax.Precision.HIGHEST
_REFS_PER_LAYER = 12   # wv, bv, wo, bo, ln1w, ln1b, w1, b1, w2, b2, ln2w, ln2b


def _ln(x, w, b):
    mu = jnp.mean(x, axis=-1, keepdims=True)
    var = jnp.mean((x - mu) ** 2, axis=-1, keepdims=True)
    return (x - mu) * jax.lax.rsqrt(var + LN_EPS) * w + b


def fused_encoder_stack_kernel(x_ref, *refs):
    """All encoder layers fused into one kernel body.

    x_ref : (N, E) f32 (the size-1 seq dim is handled by the wrapper).
    refs  : NLAYERS * 12 weight refs (pre-transposed, 2-D rows for biases/LN params)
            followed by the output ref (N, E).
    """
    out_ref = refs[-1]
    layer_refs = refs[:-1]
    nlayers = len(layer_refs) // _REFS_PER_LAYER

    x = x_ref[...]                                                    # (N, E)

    for l in range(nlayers):
        (wv, bv, wo, bo,
         ln1w, ln1b,
         w1, b1, w2, b2,
         ln2w, ln2b) = layer_refs[l * _REFS_PER_LAYER:(l + 1) * _REFS_PER_LAYER]

        # ---- self attention, S == 1: softmax over a length-1 key axis == 1.0 exactly,
        # ---- so context == V projection (q/k projections do not affect the output).
        ctx = jnp.dot(x, wv[...], precision=_HI,
                      preferred_element_type=jnp.float32) + bv[...]   # (N, E)
        attn = jnp.dot(ctx, wo[...], precision=_HI,
                       preferred_element_type=jnp.float32) + bo[...]  # (N, E)

        # ---- residual + LayerNorm 1
        h1 = _ln(x + attn, ln1w[...], ln1b[...])

        # ---- feed forward: linear1 -> relu -> linear2
        ff = jnp.dot(h1, w1[...], precision=_HI,
                     preferred_element_type=jnp.float32) + b1[...]    # (N, F)
        ff = jnp.maximum(ff, 0.0)
        ff = jnp.dot(ff, w2[...], precision=_HI,
                     preferred_element_type=jnp.float32) + b2[...]    # (N, E)

        # ---- residual + LayerNorm 2
        x = _ln(h1 + ff, ln2w[...], ln2b[...])

    out_ref[...] = x


def pack_layer_args(layer_params):
    """One-time repack of torch-layout params into kernel layout.

    - weights pre-transposed to (in_features, out_features)
    - only the V slice of in_proj is kept (S==1 => attention context == V)
    - 1-D params reshaped to lane-major (1, width) rows
    """
    E = NINP
    packed = []
    for p in layer_params:
        wv = p["in_proj_weight"][2 * E:3 * E, :].T            # (E, E)
        bv = p["in_proj_bias"][2 * E:3 * E].reshape(1, E)
        packed += [
            wv, bv,
            p["out_proj_weight"].T, p["out_proj_bias"].reshape(1, E),
            p["norm1_weight"].reshape(1, E), p["norm1_bias"].reshape(1, E),
            p["linear1_weight"].T, p["linear1_bias"].reshape(1, NHID),
            p["linear2_weight"].T, p["linear2_bias"].reshape(1, E),
            p["norm2_weight"].reshape(1, E), p["norm2_bias"].reshape(1, E),
        ]
    return tuple(packed)


def transformer_model_forward(src, packed_args):
    """Equivalent of TransformerModel.forward: src.view((1, *src.shape)) -> encoder stack.

    The whole stack is a single grid-less pallas_call (everything fits in VMEM at these
    sizes).  For realistic N/E a ("parallel",) grid over N with lane-dense (TN, E) blocks
    would be added here; unnecessary at N=8, E=32.
    """
    N, E = src.shape
    x = src.astype(jnp.float32)                               # flat (N, E) slab
    vmem = pl.BlockSpec(memory_space=pltpu.MemorySpace.VMEM)
    args = (x,) + packed_args
    out = pl.pallas_call(
        fused_encoder_stack_kernel,
        out_shape=jax.ShapeDtypeStruct((N, E), jnp.float32),
        in_specs=[vmem] * len(args),
        out_specs=vmem,
    )(*args)
    return out[None, ...]                                     # (1, N, E), matching PyTorch


# ------------------------- parameter init (deterministic, synthetic) -------------------------
def init_params(key):
    layers = []
    for l in range(NLAYERS):
        k = jax.random.fold_in(key, l)
        ks = jax.random.split(k, 7)
        E, F = NINP, NHID

        def u(kk, shape, bound):
            return jax.random.uniform(kk, shape, jnp.float32, -bound, bound)

        layers.append(dict(
            in_proj_weight=u(ks[0], (3 * E, E), 1.0 / math.sqrt(E)),
            in_proj_bias=u(ks[1], (3 * E,), 1.0 / math.sqrt(E)),
            out_proj_weight=u(ks[2], (E, E), 1.0 / math.sqrt(E)),
            out_proj_bias=jnp.zeros((E,), jnp.float32),
            linear1_weight=u(ks[3], (F, E), 1.0 / math.sqrt(E)),
            linear1_bias=u(ks[4], (F,), 1.0 / math.sqrt(E)),
            linear2_weight=u(ks[5], (E, F), 1.0 / math.sqrt(F)),
            linear2_bias=u(ks[6], (E,), 1.0 / math.sqrt(F)),
            norm1_weight=jnp.ones((E,), jnp.float32),
            norm1_bias=jnp.zeros((E,), jnp.float32),
            norm2_weight=jnp.ones((E,), jnp.float32),
            norm2_bias=jnp.zeros((E,), jnp.float32),
        ))
    return layers


# ------------------------- pure-JAX reference (full general attention) -------------------------
def reference_forward(src, layer_params):
    x = src[None, ...].astype(jnp.float32)
    S, N, E = x.shape
    H, Dh = NHEAD, NINP // NHEAD
    for p in layer_params:
        xf = x.reshape(S * N, E)
        qkv = jnp.dot(xf, p["in_proj_weight"].T, precision=_HI) + p["in_proj_bias"]
        q, k, v = jnp.split(qkv, 3, axis=-1)
        q4 = q.reshape(S, N, H, Dh)
        k4 = k.reshape(S, N, H, Dh)
        v4 = v.reshape(S, N, H, Dh)
        scores = jnp.einsum("snhd,tnhd->nhst", q4, k4, precision=_HI) / math.sqrt(Dh)
        probs = jax.nn.softmax(scores, axis=-1)
        ctx = jnp.einsum("nhst,tnhd->snhd", probs, v4, precision=_HI).reshape(S * N, E)
        attn = jnp.dot(ctx, p["out_proj_weight"].T, precision=_HI) + p["out_proj_bias"]
        h1 = _ln(xf + attn, p["norm1_weight"], p["norm1_bias"])
        ff = jnp.maximum(jnp.dot(h1, p["linear1_weight"].T, precision=_HI) + p["linear1_bias"], 0.0)
        ff = jnp.dot(ff, p["linear2_weight"].T, precision=_HI) + p["linear2_bias"]
        x = _ln(h1 + ff, p["norm2_weight"], p["norm2_bias"]).reshape(S, N, E)
    return x


if __name__ == "__main__":
    key = jax.random.PRNGKey(0)
    pkey, ekey, xkey = jax.random.split(key, 3)

    params = init_params(pkey)
    # nn.Embedding(ntoken, ninp) from __init__ (uniform(-0.1, 0.1)); unused by forward().
    _unused_embedding = jax.random.uniform(ekey, (NTOKEN, NINP), jnp.float32, -0.1, 0.1)

    # One-time repack into kernel layout (pre-transposed weights, 2-D bias rows, Wv only).
    packed = pack_layer_args(params)

    # src is 2D; forward() views it to (1, N, E) = (seq=1, batch=N, ninp).
    src = jax.random.normal(xkey, (8, NINP), jnp.float32)

    out = transformer_model_forward(src, packed)
    out = jax.block_until_ready(out)

    ref = reference_forward(src, params)
    assert out.shape == (1, 8, NINP)
    assert jnp.allclose(out, ref, atol=1e-3, rtol=1e-3), "Pallas output mismatch vs JAX reference"

    print("KERNEL_OK")
</pallas_src>

<mosaic_0001>
module attributes {stable_mosaic.version = 11 : i64} {
  func.func @fused_encoder_stack_kernel(%arg0: memref<8x32xf32, #tpu.memory_space<vmem>>, %arg1: memref<32x32xf32, #tpu.memory_space<vmem>>, %arg2: memref<1x32xf32, #tpu.memory_space<vmem>>, %arg3: memref<32x32xf32, #tpu.memory_space<vmem>>, %arg4: memref<1x32xf32, #tpu.memory_space<vmem>>, %arg5: memref<1x32xf32, #tpu.memory_space<vmem>>, %arg6: memref<1x32xf32, #tpu.memory_space<vmem>>, %arg7: memref<32x64xf32, #tpu.memory_space<vmem>>, %arg8: memref<1x64xf32, #tpu.memory_space<vmem>>, %arg9: memref<64x32xf32, #tpu.memory_space<vmem>>, %arg10: memref<1x32xf32, #tpu.memory_space<vmem>>, %arg11: memref<1x32xf32, #tpu.memory_space<vmem>>, %arg12: memref<1x32xf32, #tpu.memory_space<vmem>>, %arg13: memref<32x32xf32, #tpu.memory_space<vmem>>, %arg14: memref<1x32xf32, #tpu.memory_space<vmem>>, %arg15: memref<32x32xf32, #tpu.memory_space<vmem>>, %arg16: memref<1x32xf32, #tpu.memory_space<vmem>>, %arg17: memref<1x32xf32, #tpu.memory_space<vmem>>, %arg18: memref<1x32xf32, #tpu.memory_space<vmem>>, %arg19: memref<32x64xf32, #tpu.memory_space<vmem>>, %arg20: memref<1x64xf32, #tpu.memory_space<vmem>>, %arg21: memref<64x32xf32, #tpu.memory_space<vmem>>, %arg22: memref<1x32xf32, #tpu.memory_space<vmem>>, %arg23: memref<1x32xf32, #tpu.memory_space<vmem>>, %arg24: memref<1x32xf32, #tpu.memory_space<vmem>>, %arg25: memref<8x32xf32, #tpu.memory_space<vmem>>) attributes {dimension_semantics = [], scalar_prefetch = 0 : i64, scratch_operands = 0 : i64, tpu.core_type = #tpu.core_type<tc>} {
    %c0 = arith.constant 0 : index
    %c0_0 = arith.constant 0 : index
    %0 = vector.load %arg0[%c0, %c0_0] : memref<8x32xf32, #tpu.memory_space<vmem>>, vector<8x32xf32>
    %c0_1 = arith.constant 0 : index
    %c0_2 = arith.constant 0 : index
    %1 = vector.load %arg1[%c0_1, %c0_2] : memref<32x32xf32, #tpu.memory_space<vmem>>, vector<32x32xf32>
    %cst = arith.constant dense<0.000000e+00> : vector<8x32xf32>
    %2 = tpu.matmul %0, %1, %cst {dimension_numbers = #tpu.dot_dimension_numbers<[1], [0], [0], [1], [0, 0, 1, 1], [], []>, precision = #tpu.contract_precision<fp32>} : vector<8x32xf32>, vector<32x32xf32>, vector<8x32xf32> -> vector<8x32xf32>
    %c0_3 = arith.constant 0 : index
    %c0_4 = arith.constant 0 : index
    %3 = vector.load %arg2[%c0_3, %c0_4] : memref<1x32xf32, #tpu.memory_space<vmem>>, vector<1x32xf32>
    %4 = vector.broadcast %3 : vector<1x32xf32> to vector<8x32xf32>
    %5 = arith.addf %2, %4 : vector<8x32xf32>
    %c0_5 = arith.constant 0 : index
    %c0_6 = arith.constant 0 : index
    %6 = vector.load %arg3[%c0_5, %c0_6] : memref<32x32xf32, #tpu.memory_space<vmem>>, vector<32x32xf32>
    %cst_7 = arith.constant dense<0.000000e+00> : vector<8x32xf32>
    %7 = tpu.matmul %5, %6, %cst_7 {dimension_numbers = #tpu.dot_dimension_numbers<[1], [0], [0], [1], [0, 0, 1, 1], [], []>, precision = #tpu.contract_precision<fp32>} : vector<8x32xf32>, vector<32x32xf32>, vector<8x32xf32> -> vector<8x32xf32>
    %c0_8 = arith.constant 0 : index
    %c0_9 = arith.constant 0 : index
    %8 = vector.load %arg4[%c0_8, %c0_9] : memref<1x32xf32, #tpu.memory_space<vmem>>, vector<1x32xf32>
    %9 = vector.broadcast %8 : vector<1x32xf32> to vector<8x32xf32>
    %10 = arith.addf %7, %9 : vector<8x32xf32>
    %11 = arith.addf %0, %10 : vector<8x32xf32>
    %c0_10 = arith.constant 0 : index
    %c0_11 = arith.constant 0 : index
    %12 = vector.load %arg5[%c0_10, %c0_11] : memref<1x32xf32, #tpu.memory_space<vmem>>, vector<1x32xf32>
    %c0_12 = arith.constant 0 : index
    %c0_13 = arith.constant 0 : index
    %13 = vector.load %arg6[%c0_12, %c0_13] : memref<1x32xf32, #tpu.memory_space<vmem>>, vector<1x32xf32>
    %cst_14 = arith.constant dense<0.000000e+00> : vector<8xf32>
    %14 = vector.multi_reduction <add>, %11, %cst_14 [1] : vector<8x32xf32> to vector<8xf32>
    %15 = vector.shape_cast %14 : vector<8xf32> to vector<8x1xf32>
    %cst_15 = arith.constant 3.200000e+01 : f32
    %16 = vector.broadcast %cst_15 : f32 to vector<8x1xf32>
    %17 = arith.divf %15, %16 : vector<8x1xf32>
    %18 = vector.broadcast %17 : vector<8x1xf32> to vector<8x32xf32>
    %19 = arith.subf %11, %18 : vector<8x32xf32>
    %20 = arith.mulf %19, %19 : vector<8x32xf32>
    %cst_16 = arith.constant dense<0.000000e+00> : vector<8xf32>
    %21 = vector.multi_reduction <add>, %20, %cst_16 [1] : vector<8x32xf32> to vector<8xf32>
    %22 = vector.shape_cast %21 : vector<8xf32> to vector<8x1xf32>
    %cst_17 = arith.constant 3.200000e+01 : f32
    %23 = vector.broadcast %cst_17 : f32 to vector<8x1xf32>
    %24 = arith.divf %22, %23 : vector<8x1xf32>
    %25 = vector.broadcast %17 : vector<8x1xf32> to vector<8x32xf32>
    %26 = arith.subf %11, %25 : vector<8x32xf32>
    %cst_18 = arith.constant 9.99999974E-6 : f32
    %27 = vector.broadcast %cst_18 : f32 to vector<8x1xf32>
    %28 = arith.addf %24, %27 : vector<8x1xf32>
    %29 = math.rsqrt %28 : vector<8x1xf32>
    %30 = vector.broadcast %29 : vector<8x1xf32> to vector<8x32xf32>
    %31 = arith.mulf %26, %30 : vector<8x32xf32>
    %32 = vector.broadcast %12 : vector<1x32xf32> to vector<8x32xf32>
    %33 = arith.mulf %31, %32 : vector<8x32xf32>
    %34 = vector.broadcast %13 : vector<1x32xf32> to vector<8x32xf32>
    %35 = arith.addf %33, %34 : vector<8x32xf32>
    %c0_19 = arith.constant 0 : index
    %c0_20 = arith.constant 0 : index
    %36 = vector.load %arg7[%c0_19, %c0_20] : memref<32x64xf32, #tpu.memory_space<vmem>>, vector<32x64xf32>
    %cst_21 = arith.constant dense<0.000000e+00> : vector<8x64xf32>
    %37 = tpu.matmul %35, %36, %cst_21 {dimension_numbers = #tpu.dot_dimension_numbers<[1], [0], [0], [1], [0, 0, 1, 1], [], []>, precision = #tpu.contract_precision<fp32>} : vector<8x32xf32>, vector<32x64xf32>, vector<8x64xf32> -> vector<8x64xf32>
    %c0_22 = arith.constant 0 : index
    %c0_23 = arith.constant 0 : index
    %38 = vector.load %arg8[%c0_22, %c0_23] : memref<1x64xf32, #tpu.memory_space<vmem>>, vector<1x64xf32>
    %39 = vector.broadcast %38 : vector<1x64xf32> to vector<8x64xf32>
    %40 = arith.addf %37, %39 : vector<8x64xf32>
    %cst_24 = arith.constant 0.000000e+00 : f32
    %41 = vector.broadcast %cst_24 : f32 to vector<8x64xf32>
    %42 = arith.maximumf %40, %41 : vector<8x64xf32>
    %c0_25 = arith.constant 0 : index
    %c0_26 = arith.constant 0 : index
    %43 = vector.load %arg9[%c0_25, %c0_26] : memref<64x32xf32, #tpu.memory_space<vmem>>, vector<64x32xf32>
    %cst_27 = arith.constant dense<0.000000e+00> : vector<8x32xf32>
    %44 = tpu.matmul %42, %43, %cst_27 {dimension_numbers = #tpu.dot_dimension_numbers<[1], [0], [0], [1], [0, 0, 1, 1], [], []>, precision = #tpu.contract_precision<fp32>} : vector<8x64xf32>, vector<64x32xf32>, vector<8x32xf32> -> vector<8x32xf32>
    %c0_28 = arith.constant 0 : index
    %c0_29 = arith.constant 0 : index
    %45 = vector.load %arg10[%c0_28, %c0_29] : memref<1x32xf32, #tpu.memory_space<vmem>>, vector<1x32xf32>
    %46 = vector.broadcast %45 : vector<1x32xf32> to vector<8x32xf32>
    %47 = arith.addf %44, %46 : vector<8x32xf32>
    %48 = arith.addf %35, %47 : vector<8x32xf32>
    %c0_30 = arith.constant 0 : index
    %c0_31 = arith.constant 0 : index
    %49 = vector.load %arg11[%c0_30, %c0_31] : memref<1x32xf32, #tpu.memory_space<vmem>>, vector<1x32xf32>
    %c0_32 = arith.constant 0 : index
    %c0_33 = arith.constant 0 : index
    %50 = vector.load %arg12[%c0_32, %c0_33] : memref<1x32xf32, #tpu.memory_space<vmem>>, vector<1x32xf32>
    %cst_34 = arith.constant dense<0.000000e+00> : vector<8xf32>
    %51 = vector.multi_reduction <add>, %48, %cst_34 [1] : vector<8x32xf32> to vector<8xf32>
    %52 = vector.shape_cast %51 : vector<8xf32> to vector<8x1xf32>
    %cst_35 = arith.constant 3.200000e+01 : f32
    %53 = vector.broadcast %cst_35 : f32 to vector<8x1xf32>
    %54 = arith.divf %52, %53 : vector<8x1xf32>
    %55 = vector.broadcast %54 : vector<8x1xf32> to vector<8x32xf32>
    %56 = arith.subf %48, %55 : vector<8x32xf32>
    %57 = arith.mulf %56, %56 : vector<8x32xf32>
    %cst_36 = arith.constant dense<0.000000e+00> : vector<8xf32>
    %58 = vector.multi_reduction <add>, %57, %cst_36 [1] : vector<8x32xf32> to vector<8xf32>
    %59 = vector.shape_cast %58 : vector<8xf32> to vector<8x1xf32>
    %cst_37 = arith.constant 3.200000e+01 : f32
    %60 = vector.broadcast %cst_37 : f32 to vector<8x1xf32>
    %61 = arith.divf %59, %60 : vector<8x1xf32>
    %62 = vector.broadcast %54 : vector<8x1xf32> to vector<8x32xf32>
    %63 = arith.subf %48, %62 : vector<8x32xf32>
    %cst_38 = arith.constant 9.99999974E-6 : f32
    %64 = vector.broadcast %cst_38 : f32 to vector<8x1xf32>
    %65 = arith.addf %61, %64 : vector<8x1xf32>
    %66 = math.rsqrt %65 : vector<8x1xf32>
    %67 = vector.broadcast %66 : vector<8x1xf32> to vector<8x32xf32>
    %68 = arith.mulf %63, %67 : vector<8x32xf32>
    %69 = vector.broadcast %49 : vector<1x32xf32> to vector<8x32xf32>
    %70 = arith.mulf %68, %69 : vector<8x32xf32>
    %71 = vector.broadcast %50 : vector<1x32xf32> to vector<8x32xf32>
    %72 = arith.addf %70, %71 : vector<8x32xf32>
    %c0_39 = arith.constant 0 : index
    %c0_40 = arith.constant 0 : index
    %73 = vector.load %arg13[%c0_39, %c0_40] : memref<32x32xf32, #tpu.memory_space<vmem>>, vector<32x32xf32>
    %cst_41 = arith.constant dense<0.000000e+00> : vector<8x32xf32>
    %74 = tpu.matmul %72, %73, %cst_41 {dimension_numbers = #tpu.dot_dimension_numbers<[1], [0], [0], [1], [0, 0, 1, 1], [], []>, precision = #tpu.contract_precision<fp32>} : vector<8x32xf32>, vector<32x32xf32>, vector<8x32xf32> -> vector<8x32xf32>
    %c0_42 = arith.constant 0 : index
    %c0_43 = arith.constant 0 : index
    %75 = vector.load %arg14[%c0_42, %c0_43] : memref<1x32xf32, #tpu.memory_space<vmem>>, vector<1x32xf32>
    %76 = vector.broadcast %75 : vector<1x32xf32> to vector<8x32xf32>
    %77 = arith.addf %74, %76 : vector<8x32xf32>
    %c0_44 = arith.constant 0 : index
    %c0_45 = arith.constant 0 : index
    %78 = vector.load %arg15[%c0_44, %c0_45] : memref<32x32xf32, #tpu.memory_space<vmem>>, vector<32x32xf32>
    %cst_46 = arith.constant dense<0.000000e+00> : vector<8x32xf32>
    %79 = tpu.matmul %77, %78, %cst_46 {dimension_numbers = #tpu.dot_dimension_numbers<[1], [0], [0], [1], [0, 0, 1, 1], [], []>, precision = #tpu.contract_precision<fp32>} : vector<8x32xf32>, vector<32x32xf32>, vector<8x32xf32> -> vector<8x32xf32>
    %c0_47 = arith.constant 0 : index
    %c0_48 = arith.constant 0 : index
    %80 = vector.load %arg16[%c0_47, %c0_48] : memref<1x32xf32, #tpu.memory_space<vmem>>, vector<1x32xf32>
    %81 = vector.broadcast %80 : vector<1x32xf32> to vector<8x32xf32>
    %82 = arith.addf %79, %81 : vector<8x32xf32>
    %83 = arith.addf %72, %82 : vector<8x32xf32>
    %c0_49 = arith.constant 0 : index
    %c0_50 = arith.constant 0 : index
    %84 = vector.load %arg17[%c0_49, %c0_50] : memref<1x32xf32, #tpu.memory_space<vmem>>, vector<1x32xf32>
    %c0_51 = arith.constant 0 : index
    %c0_52 = arith.constant 0 : index
    %85 = vector.load %arg18[%c0_51, %c0_52] : memref<1x32xf32, #tpu.memory_space<vmem>>, vector<1x32xf32>
    %cst_53 = arith.constant dense<0.000000e+00> : vector<8xf32>
    %86 = vector.multi_reduction <add>, %83, %cst_53 [1] : vector<8x32xf32> to vector<8xf32>
    %87 = vector.shape_cast %86 : vector<8xf32> to vector<8x1xf32>
    %cst_54 = arith.constant 3.200000e+01 : f32
    %88 = vector.broadcast %cst_54 : f32 to vector<8x1xf32>
    %89 = arith.divf %87, %88 : vector<8x1xf32>
    %90 = vector.broadcast %89 : vector<8x1xf32> to vector<8x32xf32>
    %91 = arith.subf %83, %90 : vector<8x32xf32>
    %92 = arith.mulf %91, %91 : vector<8x32xf32>
    %cst_55 = arith.constant dense<0.000000e+00> : vector<8xf32>
    %93 = vector.multi_reduction <add>, %92, %cst_55 [1] : vector<8x32xf32> to vector<8xf32>
    %94 = vector.shape_cast %93 : vector<8xf32> to vector<8x1xf32>
    %cst_56 = arith.constant 3.200000e+01 : f32
    %95 = vector.broadcast %cst_56 : f32 to vector<8x1xf32>
    %96 = arith.divf %94, %95 : vector<8x1xf32>
    %97 = vector.broadcast %89 : vector<8x1xf32> to vector<8x32xf32>
    %98 = arith.subf %83, %97 : vector<8x32xf32>
    %cst_57 = arith.constant 9.99999974E-6 : f32
    %99 = vector.broadcast %cst_57 : f32 to vector<8x1xf32>
    %100 = arith.addf %96, %99 : vector<8x1xf32>
    %101 = math.rsqrt %100 : vector<8x1xf32>
    %102 = vector.broadcast %101 : vector<8x1xf32> to vector<8x32xf32>
    %103 = arith.mulf %98, %102 : vector<8x32xf32>
    %104 = vector.broadcast %84 : vector<1x32xf32> to vector<8x32xf32>
    %105 = arith.mulf %103, %104 : vector<8x32xf32>
    %106 = vector.broadcast %85 : vector<1x32xf32> to vector<8x32xf32>
    %107 = arith.addf %105, %106 : vector<8x32xf32>
    %c0_58 = arith.constant 0 : index
    %c0_59 = arith.constant 0 : index
    %108 = vector.load %arg19[%c0_58, %c0_59] : memref<32x64xf32, #tpu.memory_space<vmem>>, vector<32x64xf32>
    %cst_60 = arith.constant dense<0.000000e+00> : vector<8x64xf32>
    %109 = tpu.matmul %107, %108, %cst_60 {dimension_numbers = #tpu.dot_dimension_numbers<[1], [0], [0], [1], [0, 0, 1, 1], [], []>, precision = #tpu.contract_precision<fp32>} : vector<8x32xf32>, vector<32x64xf32>, vector<8x64xf32> -> vector<8x64xf32>
    %c0_61 = arith.constant 0 : index
    %c0_62 = arith.constant 0 : index
    %110 = vector.load %arg20[%c0_61, %c0_62] : memref<1x64xf32, #tpu.memory_space<vmem>>, vector<1x64xf32>
    %111 = vector.broadcast %110 : vector<1x64xf32> to vector<8x64xf32>
    %112 = arith.addf %109, %111 : vector<8x64xf32>
    %cst_63 = arith.constant 0.000000e+00 : f32
    %113 = vector.broadcast %cst_63 : f32 to vector<8x64xf32>
    %114 = arith.maximumf %112, %113 : vector<8x64xf32>
    %c0_64 = arith.constant 0 : index
    %c0_65 = arith.constant 0 : index
    %115 = vector.load %arg21[%c0_64, %c0_65] : memref<64x32xf32, #tpu.memory_space<vmem>>, vector<64x32xf32>
    %cst_66 = arith.constant dense<0.000000e+00> : vector<8x32xf32>
    %116 = tpu.matmul %114, %115, %cst_66 {dimension_numbers = #tpu.dot_dimension_numbers<[1], [0], [0], [1], [0, 0, 1, 1], [], []>, precision = #tpu.contract_precision<fp32>} : vector<8x64xf32>, vector<64x32xf32>, vector<8x32xf32> -> vector<8x32xf32>
    %c0_67 = arith.constant 0 : index
    %c0_68 = arith.constant 0 : index
    %117 = vector.load %arg22[%c0_67, %c0_68] : memref<1x32xf32, #tpu.memory_space<vmem>>, vector<1x32xf32>
    %118 = vector.broadcast %117 : vector<1x32xf32> to vector<8x32xf32>
    %119 = arith.addf %116, %118 : vector<8x32xf32>
    %120 = arith.addf %107, %119 : vector<8x32xf32>
    %c0_69 = arith.constant 0 : index
    %c0_70 = arith.constant 0 : index
    %121 = vector.load %arg23[%c0_69, %c0_70] : memref<1x32xf32, #tpu.memory_space<vmem>>, vector<1x32xf32>
    %c0_71 = arith.constant 0 : index
    %c0_72 = arith.constant 0 : index
    %122 = vector.load %arg24[%c0_71, %c0_72] : memref<1x32xf32, #tpu.memory_space<vmem>>, vector<1x32xf32>
    %cst_73 = arith.constant dense<0.000000e+00> : vector<8xf32>
    %123 = vector.multi_reduction <add>, %120, %cst_73 [1] : vector<8x32xf32> to vector<8xf32>
    %124 = vector.shape_cast %123 : vector<8xf32> to vector<8x1xf32>
    %cst_74 = arith.constant 3.200000e+01 : f32
    %125 = vector.broadcast %cst_74 : f32 to vector<8x1xf32>
    %126 = arith.divf %124, %125 : vector<8x1xf32>
    %127 = vector.broadcast %126 : vector<8x1xf32> to vector<8x32xf32>
    %128 = arith.subf %120, %127 : vector<8x32xf32>
    %129 = arith.mulf %128, %128 : vector<8x32xf32>
    %cst_75 = arith.constant dense<0.000000e+00> : vector<8xf32>
    %130 = vector.multi_reduction <add>, %129, %cst_75 [1] : vector<8x32xf32> to vector<8xf32>
    %131 = vector.shape_cast %130 : vector<8xf32> to vector<8x1xf32>
    %cst_76 = arith.constant 3.200000e+01 : f32
    %132 = vector.broadcast %cst_76 : f32 to vector<8x1xf32>
    %133 = arith.divf %131, %132 : vector<8x1xf32>
    %134 = vector.broadcast %126 : vector<8x1xf32> to vector<8x32xf32>
    %135 = arith.subf %120, %134 : vector<8x32xf32>
    %cst_77 = arith.constant 9.99999974E-6 : f32
    %136 = vector.broadcast %cst_77 : f32 to vector<8x1xf32>
    %137 = arith.addf %133, %136 : vector<8x1xf32>
    %138 = math.rsqrt %137 : vector<8x1xf32>
    %139 = vector.broadcast %138 : vector<8x1xf32> to vector<8x32xf32>
    %140 = arith.mulf %135, %139 : vector<8x32xf32>
    %141 = vector.broadcast %121 : vector<1x32xf32> to vector<8x32xf32>
    %142 = arith.mulf %140, %141 : vector<8x32xf32>
    %143 = vector.broadcast %122 : vector<1x32xf32> to vector<8x32xf32>
    %144 = arith.addf %142, %143 : vector<8x32xf32>
    %c0_78 = arith.constant 0 : index
    %c0_79 = arith.constant 0 : index
    %145 = vector.load %arg25[%c0_78, %c0_79] : memref<8x32xf32, #tpu.memory_space<vmem>>, vector<8x32xf32>
    tpu.vector_store %arg25[%c0_78, %c0_79], %144 {strides = array<i32>} : memref<8x32xf32, #tpu.memory_space<vmem>>, vector<8x32xf32>,
    return
  }
}

</mosaic_0001>

<bundles_post_ra>
// kernel: tpu_custom_call.1
= control target key start
LH: loop header
LB: loop body
LE: loop exit
PB: predicated region body
PF: predicated region fallthrough
CT: control target
= control target key end

     0   :  { %s2540_s0 = inlined_call_operand.hbm [shape: f32[8,32], index: 0, kind: input, shape index: {}]   ;;  %s2541_s1 = inlined_call_operand.vmem [shape: f32[32,32], index: 1, kind: input, shape index: {}]   ;;  %s2542_s2 = inlined_call_operand.hbm [shape: f32[1,32], index: 2, kind: input, shape index: {}]   ;;  %s2543_s3 = inlined_call_operand.vmem [shape: f32[32,32], index: 3, kind: input, shape index: {}]   ;;  %s2544_s4 = inlined_call_operand.vmem [shape: f32[1,32], index: 4, kind: input, shape index: {}]   ;;  %s2545_s5 = inlined_call_operand.vmem [shape: f32[1,32], index: 5, kind: input, shape index: {}]   ;;  %s2546_s6 = inlined_call_operand.vmem [shape: f32[1,32], index: 6, kind: input, shape index: {}]   ;;  %s2547_s7 = inlined_call_operand.vmem [shape: f32[32,64], index: 7, kind: input, shape index: {}]   ;;  %s2548_s8 = inlined_call_operand.vmem [shape: f32[1,64], index: 8, kind: input, shape index: {}]   ;;  %s2549_s9 = inlined_call_operand.vmem [shape: f32[64,32], index: 9, kind: input, shape index: {}]   ;;  %s2550_s10 = inlined_call_operand.vmem [shape: f32[1,32], index: 10, kind: input, shape index: {}]   ;;  %s2551_s11 = inlined_call_operand.vmem [shape: f32[1,32], index: 11, kind: input, shape index: {}]   ;;  %s2552_s12 = inlined_call_operand.vmem [shape: f32[1,32], index: 12, kind: input, shape index: {}]   ;;  %s2553_s13 = inlined_call_operand.vmem [shape: f32[32,32], index: 13, kind: input, shape index: {}]   ;;  %s2554_s14 = inlined_call_operand.vmem [shape: f32[1,32], index: 14, kind: input, shape index: {}]   ;;  %s2555_s15 = inlined_call_operand.vmem [shape: f32[32,32], index: 15, kind: input, shape index: {}]   ;;  %s2556_s16 = inlined_call_operand.vmem [shape: f32[1,32], index: 16, kind: input, shape index: {}]   ;;  %s2557_s17 = inlined_call_operand.vmem [shape: f32[1,32], index: 17, kind: input, shape index: {}]   ;;  %s2558_s18 = inlined_call_operand.vmem [shape: f32[1,32], index: 18, kind: input, shape index: {}]   ;;  %s2559_s19 = inlined_call_operand.hbm [shape: f32[32,64], index: 19, kind: input, shape index: {}]   ;;  %s2560_s20 = inlined_call_operand.vmem [shape: f32[1,64], index: 20, kind: input, shape index: {}]   ;;  %s2561_s21 = inlined_call_operand.vmem [shape: f32[64,32], index: 21, kind: input, shape index: {}]   ;;  %s2562_s22 = inlined_call_operand.vmem [shape: f32[1,32], index: 22, kind: input, shape index: {}]   ;;  %s2563_s23 = inlined_call_operand.vmem [shape: f32[1,32], index: 23, kind: input, shape index: {}]   ;;  %s2564_s24 = inlined_call_operand.vmem [shape: f32[1,32], index: 24, kind: input, shape index: {}]   ;;  %s2565_s25 = inlined_call_operand.hbm [shape: f32[8,32], index: 25, kind: output, shape index: {}]  }
   0x1   :  { %2570 = sst [smem:[#allocation12_spill]] %s2540_s0 }
   0x2   :  { %2571 = sst [smem:[#allocation13_spill]] %s2541_s1 }
   0x3   :  { %2572 = sst [smem:[#allocation14_spill]] %s2542_s2 }
   0x4   :  { %2573 = sst [smem:[#allocation15_spill]] %s2543_s3 }
   0x5   :  { %2574 = sst [smem:[#allocation16_spill]] %s2544_s4 }
   0x6   :  { %2575 = sst [smem:[#allocation17_spill]] %s2545_s5 }
   0x7   :  { %2576 = sst [smem:[#allocation18_spill]] %s2546_s6 }
   0x8   :  { %2577 = sst [smem:[#allocation19_spill]] %s2547_s7 }
   0x9   :  { %2578 = sst [smem:[#allocation20_spill]] %s2548_s8 }
   0xa   :  { %2579 = sst [smem:[#allocation21_spill]] %s2549_s9 }
   0xb   :  { %30 = vsyncpa [#allocation3], 0 }
   0xc   :  { %31 = vsyncpa [#allocation6], 0  ;;  %s2580_s6 = sld [smem:[#allocation14_spill]] }
  0x12   :  { %s51_s30 = sshll.u32 %s2580_s6, 4  ;;  %s52_s30 = int_to_ptr.hbm [resolvable:$true] %s51_s30 }
  0x13   :  { %32 = vsyncpa [#allocation4], 0  ;;  %s2102_s7 = smov [#allocation5]   ;;  %s2581_s8 = sld [smem:[#allocation12_spill]] }
  0x14   :  { %s53_s3 = sshll.u32 %s2102_s7, 4  ;;  %s2103_s4 = smov [#allocation2]   ;;  %s54_s3 = int_to_ptr.vmem [resolvable:$true] %s53_s3 }
  0x15   :  { %56 = dma.hbm_to_vmem [thread:$0]  %s52_s30, 16, %s54_s3, [#allocation6]  }
  0x16   :  { %s40_s28 = sshll.u32 %s2103_s4, 4  ;;  %s93_s0 = sshll.u32 %s2559_s19, 4  ;;  %s41_s28 = int_to_ptr.vmem [resolvable:$true] %s40_s28  ;;  %s94_s0 = int_to_ptr.hbm [resolvable:$true] %s93_s0 }
  0x17   :  { %s2104_s29 = smov [#allocation7]   ;;  %s2105_s6 = smov 128  }
  0x18   :  { %s95_s2 = sshll.u32 %s2104_s29, 4  ;;  %s2106_s7 = smov 8   ;;  %s96_s2 = int_to_ptr.vmem [resolvable:$true] %s95_s2 }
  0x19   :  { %s38_s27 = sshll.u32 %s2581_s8, 4  ;;  %s39_s27 = int_to_ptr.hbm [resolvable:$true] %s38_s27 }
  0x1a   :  { %43 = dma.hbm_to_vmem [thread:$0]  %s39_s27, 128, %s41_s28, [#allocation3]  }
  0x1b   :  { %101 = dma.hbm_to_vmem [thread:$0]  %s94_s0, 512, %s96_s2, [#allocation6], %s2105_s6, %s2105_s6, %s2106_s7  }
  0x1c   :  { %2096 = dma.done.wait [#allocation3], 128  }
  0x1d   :  { %2097 = vsyncadd [#allocation3], 4294967168 }
  0x1e   :  { %2098 = dma.done.wait [#allocation6], 528  }
  0x1f   :  { %2099 = vsyncadd [#allocation6], 4294966768  ;;  %vm133_vm0 = vcmask 261120   ;;  %s2582_s26 = sld [smem:[#allocation13_spill]]  ;;  %v2260_v7 = vld [vmem:[#allocation2] sm:$0xff]  ;;  %vm767_vm5 = vcmask 523264  }
  0x20   :  { %v135_v9 = vsel %vm133_vm0, %v2260_v7, 0  ;;  %s2583_s0 = sld [smem:[#allocation15_spill]]  ;;  %v1974_v55 = vld [vmem:[#allocation5] ss:$0 sm:$0xff] }
  0x21   :  { %v157_v11 = vand.u32 4294901760, %v135_v9  ;;  %s2584_s19 = sld [smem:[#allocation16_spill]] }
  0x22   :  { %s2585_s4 = sld [smem:[#allocation19_spill]] }
  0x23   :  { %v158_v16 = vsub.f32 %v135_v9, %v157_v11  ;;  %s2586_s30 = sld [smem:[#allocation17_spill]] }
  0x24   :  { %s2587_s1 = sld [smem:[#allocation18_spill]] }
  0x25   :  { %v128_v0 = vld [vmem:[%s2582_s26 + $0x18] sm:$0xff]  ;;  %v127_v1 = vld [vmem:[%s2582_s26 + $0x10] sm:$0xff]  ;;  %v126_v2 = vld [vmem:[%s2582_s26 + $0x8] sm:$0xff]  ;;  %v159_v21 = vand.u32 4294901760, %v158_v16  ;;  %s2588_s27 = sld [smem:[#allocation21_spill]] }
  0x26   :  { %v149_v3 = vand.u32 4294901760, %v128_v0  ;;  %v151_v4 = vand.u32 4294901760, %v127_v1  ;;  %v153_v5 = vand.u32 4294901760, %v126_v2  ;;  %v125_v6 = vld [vmem:[%s2582_s26] sm:$0xff]  ;;  %v325_v31 = vld [vmem:[%s2583_s0 + $0x18] sm:$0xff]  ;;  %v324_v33 = vld [vmem:[%s2583_s0 + $0x10] sm:$0xff] }
  0x27   :  { %v155_v8 = vand.u32 4294901760, %v125_v6  ;;  %v160_v25 = vsub.f32 %v158_v16, %v159_v21  ;;  %v345_v32 = vand.u32 4294901760, %v325_v31  ;;  %v347_v35 = vand.u32 4294901760, %v324_v33  ;;  %v323_v36 = vld [vmem:[%s2583_s0 + $0x8] sm:$0xff]  ;;  %v322_v40 = vld [vmem:[%s2583_s0] sm:$0xff] }
  0x28   :  { %150 = vmatpush.msra.mxu2 %v149_v3  ;;  %v179_v10 = vsub.f32 %v128_v0, %v149_v3  ;;  %v185_v12 = vsub.f32 %v127_v1, %v151_v4  ;;  %v191_v13 = vsub.f32 %v126_v2, %v153_v5  ;;  %310 = vmatpush.msra.mxu1 %v149_v3  ;;  %v349_v39 = vand.u32 4294901760, %v323_v36 }
  0x29   :  { %v197_v14 = vsub.f32 %v125_v6, %v155_v8  ;;  %v161_v28 = vand.u32 4294901760, %v160_v25  ;;  %v375_v34 = vsub.f32 %v325_v31, %v345_v32  ;;  %v381_v38 = vsub.f32 %v324_v33, %v347_v35 }
  0x2a   :  { %152 = vmatpush.msra.mxu2 %v151_v4  ;;  %v180_v15 = vand.u32 4294901760, %v179_v10  ;;  %v186_v17 = vand.u32 4294901760, %v185_v12  ;;  %v192_v18 = vand.u32 4294901760, %v191_v13  ;;  %312 = vmatpush.msra.mxu1 %v151_v4  ;;  %v387_v43 = vsub.f32 %v323_v36, %v349_v39 }
  0x2b   :  { %v198_v19 = vand.u32 4294901760, %v197_v14  ;;  %v376_v37 = vand.u32 4294901760, %v375_v34  ;;  %v382_v42 = vand.u32 4294901760, %v381_v38  ;;  %v351_v44 = vand.u32 4294901760, %v322_v40 }
  0x2c   :  { %154 = vmatpush.msra.mxu2 %v153_v5  ;;  %v181_v20 = vsub.f32 %v179_v10, %v180_v15  ;;  %v187_v22 = vsub.f32 %v185_v12, %v186_v17  ;;  %v193_v23 = vsub.f32 %v191_v13, %v192_v18  ;;  %279 = vmatpush.msra.mxu0 %v180_v15  ;;  %v388_v47 = vand.u32 4294901760, %v387_v43 }
  0x2d   :  { %314 = vmatpush.msra.mxu1 %v153_v5  ;;  %v199_v27 = vsub.f32 %v197_v14, %v198_v19  ;;  %v377_v41 = vsub.f32 %v375_v34, %v376_v37  ;;  %v383_v46 = vsub.f32 %v381_v38, %v382_v42  ;;  %v393_v48 = vsub.f32 %v322_v40, %v351_v44 }
  0x2e   :  { %156 = vmatpush.msra.mxu2 %v155_v8  ;;  %v182_v24 = vand.u32 4294901760, %v181_v20  ;;  %v188_v26 = vand.u32 4294901760, %v187_v22  ;;  %283 = vmatpush.msra.mxu0 %v186_v17  ;;  %v194_v29 = vand.u32 4294901760, %v193_v23  ;;  %v389_v50 = vsub.f32 %v387_v43, %v388_v47 }
  0x2f   :  { %316 = vmatpush.msra.mxu1 %v155_v8  ;;  %162 = vmatmul.f32.vlgmr.msra.gmra.mxu2 %v161_v28  ;;  %v200_v30 = vand.u32 4294901760, %v199_v27  ;;  %v378_v45 = vand.u32 4294901760, %v377_v41  ;;  %v384_v49 = vand.u32 4294901760, %v383_v46  ;;  %v394_v51 = vand.u32 4294901760, %v393_v48  ;;  %v558_v46 = vld [vmem:[%s2585_s4] sm:$0xff] }
  0x30   :  { %221 = vmatpush.msrb.mxu2 %v179_v10  ;;  %183 = vmatpush.msra.mxu3 %v182_v24  ;;  %v390_v52 = vand.u32 4294901760, %v389_v50  ;;  %v587_v50 = vand.u32 4294901760, %v558_v46 }
  0x31   :  { %287 = vmatpush.msra.mxu0 %v192_v18  ;;  %318 = vmatmul.f32.vlgmr.msra.gmra.mxu1 %v157_v11  ;;  %v395_v53 = vsub.f32 %v393_v48, %v394_v51 }
  0x32   :  { %224 = vmatpush.msrb.mxu2 %v185_v12  ;;  %189 = vmatpush.msra.mxu3 %v188_v26  ;;  %v2107_v26 = vmov 32.0  }
  0x33   :  { %291 = vmatpush.msra.mxu0 %v198_v19  ;;  %446 = vmatpush.msrb.mxu1 %v345_v32  ;;  %v396_v54 = vand.u32 4294901760, %v395_v53  ;;  %1990 = vrcp.f32 %v2107_v26 }
  0x34   :  { %227 = vmatpush.msrb.mxu2 %v191_v13  ;;  %195 = vmatpush.msra.mxu3 %v194_v29 }
  0x35   :  { %293 = vmatmul.f32.vlgmr.msra.gmra.mxu0 %v157_v11  ;;  %448 = vmatpush.msrb.mxu1 %v347_v35 }
  0x36   :  { %230 = vmatpush.msrb.mxu2 %v197_v14  ;;  %201 = vmatpush.msra.mxu3 %v200_v30 }
  0x37   :  { %203 = vmatmul.f32.vlgmr.msra.gmra.mxu3 %v157_v11  ;;  %233 = vmatmul.f32.vlgmr.msrb.gmra.mxu2 %v158_v16  ;;  %v1975_v11 = vld [vmem:[%s2584_s19] ss:$0 sm:$0xff] }
  0x38   :  { %250 = vmatpush.msrb.mxu3 %v149_v3  ;;  %346 = vmatpush.msra.mxu2 %v345_v32 }
  0x39   :  { %417 = vmatpush.msrb.mxu0 %v375_v34  ;;  %450 = vmatpush.msrb.mxu1 %v349_v39  ;;  %v1991_v27 = vpop.eup %1990 }
  0x3a   :  { %252 = vmatpush.msrb.mxu3 %v151_v4  ;;  %348 = vmatpush.msra.mxu2 %v347_v35  ;;  %v525_v28 = vmul.f32 32.0, %v1991_v27  ;;  %vm529_vm1 = vweird.f32 %v1991_v27 }
  0x3b   :  { %420 = vmatpush.msrb.mxu0 %v381_v38  ;;  %452 = vmatpush.msrb.mxu1 %v351_v44 }
  0x3c   :  { %254 = vmatpush.msrb.mxu3 %v153_v5  ;;  %350 = vmatpush.msra.mxu2 %v349_v39  ;;  %v526_v29 = vsub.f32 1.0, %v525_v28  ;;  %v759_v28 = vld [vmem:[%s2588_s27 + $0x20] sm:$0xff] }
  0x3d   :  { %423 = vmatpush.msrb.mxu0 %v387_v43 }
  0x3e   :  { %256 = vmatpush.msrb.mxu3 %v155_v8  ;;  %352 = vmatpush.msra.mxu2 %v351_v44  ;;  %v527_v30 = vmul.f32 %v1991_v27, %v526_v29 }
  0x3f   :  { %260 = vmatmul.f32.vlgmr.msrb.gmra.mxu3 %v159_v21  ;;  %426 = vmatpush.msrb.mxu0 %v393_v48 }
  0x40   :  { %379 = vmatpush.msra.mxu3 %v378_v45  ;;  %475 = vmatpush.msrb.mxu2 %v376_v37  ;;  %v528_v31 = vadd.f32 %v1991_v27, %v527_v30  ;;  %v561_v37 = vld [vmem:[%s2585_s4 + $0x18] sm:$0xff] }
  0x41   :  { %v581_v38 = vand.u32 4294901760, %v561_v37 }
  0x42   :  { %385 = vmatpush.msra.mxu3 %v384_v49  ;;  %479 = vmatpush.msrb.mxu2 %v382_v42  ;;  %v559_v42 = vld [vmem:[%s2585_s4 + $0x8] sm:$0xff] }
  0x43   :  { %v611_v40 = vsub.f32 %v561_v37, %v581_v38  ;;  %582 = vmatpush.msra.mxu0 %v581_v38  ;;  %v585_v45 = vand.u32 4294901760, %v559_v42 }
  0x44   :  { %391 = vmatpush.msra.mxu3 %v390_v52  ;;  %483 = vmatpush.msrb.mxu2 %v388_v47 }
  0x45   :  { %v612_v43 = vand.u32 4294901760, %v611_v40  ;;  %v623_v49 = vsub.f32 %v559_v42, %v585_v45 }
  0x46   :  { %397 = vmatpush.msra.mxu3 %v396_v54  ;;  %487 = vmatpush.msrb.mxu2 %v394_v51  ;;  %v629_v54 = vsub.f32 %v558_v46, %v587_v50 }
  0x47   :  { %v613_v47 = vsub.f32 %v611_v40, %v612_v43  ;;  %v624_v53 = vand.u32 4294901760, %v623_v49 }
  0x48   :  { %506 = vmatpush.msrb.mxu3 %v345_v32  ;;  %v2282_v32 = vsel %vm529_vm1, %v1991_v27, %v528_v31 }
  0x49   :  { %v614_v51 = vand.u32 4294901760, %v613_v47 }
  0x4a   :  { %508 = vmatpush.msrb.mxu3 %v347_v35 }
  0x4b   :  { %615 = vmatpush.msra.mxu1 %v614_v51  ;;  %v755_v51 = vld [vmem:[%s2588_s27] sm:$0xff] }
  0x4c   :  { %510 = vmatpush.msrb.mxu3 %v349_v39  ;;  %v560_v39 = vld [vmem:[%s2585_s4 + $0x10] sm:$0xff]  ;;  %s2589_s4 = sld [smem:[#allocation20_spill]] }
  0x4d   :  { %v583_v41 = vand.u32 4294901760, %v560_v39 }
  0x4e   :  { %512 = vmatpush.msrb.mxu3 %v351_v44 }
  0x4f   :  { %v617_v44 = vsub.f32 %v560_v39, %v583_v41  ;;  %584 = vmatpush.msra.mxu0 %v583_v41  ;;  %v757_v39 = vld [vmem:[%s2588_s27 + $0x10] sm:$0xff] }
  0x51   :  { %v618_v48 = vand.u32 4294901760, %v617_v44  ;;  %586 = vmatpush.msra.mxu0 %v585_v45 }
  0x53   :  { %v619_v52 = vsub.f32 %v617_v44, %v618_v48  ;;  %588 = vmatpush.msra.mxu0 %v587_v50 }
  0xae   :  { %v319_v1 = vpop.f32.mrf.mxu1 }
  0xb2   :  { %v163_v56 = vpop.f32.mrf.mxu2  ;;  %v294_v63 = vpop.f32.mrf.mxu0 }
  0xb3   :  { %v164_v57 = vadd.f32 %v1974_v55, %v163_v56  ;;  %v620_v55 = vand.u32 4294901760, %v619_v52  ;;  %v625_v56 = vsub.f32 %v623_v49, %v624_v53 }
  0xb5   :  { %621 = vmatpush.msra.mxu1 %v620_v55  ;;  %v793_v55 = vand.u32 4294901760, %v755_v51 }
  0xba   :  { %v204_v58 = vpop.f32.mrf.mxu3  ;;  %v234_v60 = vpop.f32.mrf.mxu2 }
  0xbb   :  { %v205_v59 = vadd.f32 %v204_v58, %v164_v57  ;;  %v630_v57 = vand.u32 4294901760, %v629_v54  ;;  %v626_v58 = vand.u32 4294901760, %v625_v56 }
  0xbd   :  { %v235_v61 = vadd.f32 %v234_v60, %v205_v59  ;;  %v631_v59 = vsub.f32 %v629_v54, %v630_v57  ;;  %627 = vmatpush.msra.mxu1 %v626_v58 }
  0xbf   :  { %v632_v60 = vand.u32 4294901760, %v631_v59  ;;  %v855_v59 = vsub.f32 %v755_v51, %v793_v55 }
  0xc1   :  { %633 = vmatpush.msra.mxu1 %v632_v60 }
  0xc2   :  { %v261_v62 = vpop.f32.mrf.mxu3 }
  0xc3   :  { %v262_v0 = vadd.f32 %v261_v62, %v235_v61 }
  0xc5   :  { %v295_v2 = vadd.f32 %v294_v63, %v262_v0 }
  0xc7   :  { %v320_v3 = vadd.f32 %v319_v1, %v295_v2 }
  0xc9   :  { %v331_v4 = vsel %vm133_vm0, %v320_v3, 0 }
  0xca   :  { %v353_v5 = vand.u32 4294901760, %v331_v4 }
  0xcc   :  { %v354_v6 = vsub.f32 %v331_v4, %v353_v5  ;;  %399 = vmatmul.f32.vlgmr.msra.gmra.mxu3 %v353_v5 }
  0xcd   :  { %682 = vmatpush.msra.mxu3 %v581_v38 }
  0xce   :  { %429 = vmatmul.f32.vlgmr.msrb.gmra.mxu0 %v354_v6  ;;  %v355_v8 = vand.u32 4294901760, %v354_v6 }
  0xcf   :  { %684 = vmatpush.msra.mxu3 %v583_v41  ;;  %711 = vmatpush.msrb.mxu0 %v612_v43  ;;  %v789_v43 = vand.u32 4294901760, %v757_v39 }
  0xd0   :  { %v356_v9 = vsub.f32 %v354_v6, %v355_v8  ;;  %456 = vmatmul.f32.vlgmr.msrb.gmra.mxu1 %v355_v8  ;;  %v1976_v6 = vld [vmem:[%s2586_s30] ss:$0 sm:$0xff] }
  0xd1   :  { %686 = vmatpush.msra.mxu3 %v585_v45  ;;  %715 = vmatpush.msrb.mxu0 %v618_v48  ;;  %v843_v48 = vsub.f32 %v757_v39, %v789_v43 }
  0xd2   :  { %v357_v10 = vand.u32 4294901760, %v356_v9  ;;  %742 = vmatpush.msrb.mxu1 %v581_v38 }
  0xd3   :  { %688 = vmatpush.msra.mxu3 %v587_v50  ;;  %719 = vmatpush.msrb.mxu0 %v624_v53  ;;  %v844_v53 = vand.u32 4294901760, %v843_v48 }
  0xd4   :  { %358 = vmatmul.f32.vlgmr.msra.gmra.mxu2 %v357_v10  ;;  %514 = vmatmul.f32.vlgmr.msrb.gmra.mxu3 %v353_v5  ;;  %v1977_v10 = vld [vmem:[%s2587_s1] ss:$0 sm:$0xff] }
  0xd5   :  { %653 = vmatpush.msra.mxu2 %v611_v40  ;;  %723 = vmatpush.msrb.mxu0 %v630_v57  ;;  %v845_v57 = vsub.f32 %v843_v48, %v844_v53 }
  0xd6   :  { %744 = vmatpush.msrb.mxu1 %v583_v41 }
  0xd7   :  { %656 = vmatpush.msra.mxu2 %v617_v44 }
  0xd8   :  { %746 = vmatpush.msrb.mxu1 %v585_v45  ;;  %v756_v45 = vld [vmem:[%s2588_s27 + $0x8] sm:$0xff] }
  0xd9   :  { %659 = vmatpush.msra.mxu2 %v623_v49  ;;  %v791_v49 = vand.u32 4294901760, %v756_v45 }
  0xda   :  { %748 = vmatpush.msrb.mxu1 %v587_v50 }
  0xdb   :  { %662 = vmatpush.msra.mxu2 %v629_v54  ;;  %v849_v54 = vsub.f32 %v756_v45, %v791_v49  ;;  %v1044_v45 = vld [vmem:[%s2553_s13 + $0x18] sm:$0xff] }
  0xdc   :  { %489 = vmatmul.f32.vlgmr.msrb.gmra.mxu2 %v353_v5 }
  0xdd   :  { %v850_v58 = vand.u32 4294901760, %v849_v54 }
 0x14b   :  { %v430_v16 = vpop.f32.mrf.mxu0 }
 0x14d   :  { %v457_v18 = vpop.f32.mrf.mxu1 }
 0x14f   :  { %v400_v12 = vpop.f32.mrf.mxu3 }
 0x157   :  { %v359_v13 = vpop.f32.mrf.mxu2  ;;  %v515_v22 = vpop.f32.mrf.mxu3 }
 0x158   :  { %v360_v14 = vadd.f32 %v1975_v11, %v359_v13 }
 0x15a   :  { %v401_v15 = vadd.f32 %v400_v12, %v360_v14 }
 0x15c   :  { %v431_v17 = vadd.f32 %v430_v16, %v401_v15 }
 0x15e   :  { %v458_v19 = vadd.f32 %v457_v18, %v431_v17 }
 0x15f   :  { %v490_v20 = vpop.f32.mrf.mxu2 }
 0x160   :  { %v491_v21 = vadd.f32 %v490_v20, %v458_v19  ;;  %v762_v19 = vld [vmem:[%s2588_s27 + $0x38] sm:$0xff] }
 0x161   :  { %v2317_v20 = vand.u32 4294901760, %v762_v19 }
 0x162   :  { %v516_v23 = vadd.f32 %v515_v22, %v491_v21  ;;  %v761_v21 = vld [vmem:[%s2588_s27 + $0x30] sm:$0xff] }
 0x163   :  { %v2323_v22 = vsub.f32 %v762_v19, %v2317_v20  ;;  %780 = vmatpush.msrb.mxu2 %v2317_v20 }
 0x164   :  { %v518_v24 = vadd.f32 %v516_v23, %v2260_v7  ;;  %v2325_v23 = vand.u32 4294901760, %v761_v21 }
 0x166   :  { %v521_v25 = vsel %vm133_vm0, %v518_v24, 0.0  ;;  %v2334_v26 = vsub.f32 %v761_v21, %v2325_v23  ;;  %782 = vmatpush.msrb.mxu2 %v2325_v23 }
 0x167   :  { %522 = vadd.xlane.f32.xlu0 %v521_v25  ;;  %v814_v25 = vand.u32 4294901760, %v2323_v22 }
 0x168   :  { %v820_v30 = vand.u32 4294901760, %v2334_v26 }
 0x169   :  { %v815_v29 = vsub.f32 %v2323_v22, %v814_v25 }
 0x1da   :  { %v523_v33 = vpop.xlane.xlu0 %522 }
 0x1db   :  { %v531_v34 = vmul.f32 %v2282_v32, %v523_v33  ;;  %v2349_v33 = vand.u32 4294901760, %v759_v28 }
 0x1dd   :  { %v2285_v35 = vsub.f32 %v518_v24, %v531_v34  ;;  %v760_v24 = vld [vmem:[%s2588_s27 + $0x28] sm:$0xff]  ;;  %v758_v34 = vld [vmem:[%s2588_s27 + $0x18] sm:$0xff]  ;;  %v831_v37 = vsub.f32 %v759_v28, %v2349_v33 }
 0x1de   :  { %v2336_v27 = vand.u32 4294901760, %v760_v24  ;;  %v787_v38 = vand.u32 4294901760, %v758_v34 }
 0x1df   :  { %v533_v7 = vmul.f32 %v2285_v35, %v2285_v35  ;;  %v832_v42 = vand.u32 4294901760, %v831_v37 }
 0x1e0   :  { %v2347_v31 = vsub.f32 %v760_v24, %v2336_v27  ;;  %784 = vmatpush.msrb.mxu2 %v2336_v27  ;;  %v837_v44 = vsub.f32 %v758_v34, %v787_v38 }
 0x1e1   :  { %v534_v36 = vsel %vm133_vm0, %v533_v7, 0.0  ;;  %v821_v7 = vsub.f32 %v2334_v26, %v820_v30  ;;  %v833_v47 = vsub.f32 %v831_v37, %v832_v42 }
 0x1e2   :  { %535 = vadd.xlane.f32.xlu0 %v534_v36  ;;  %v826_v36 = vand.u32 4294901760, %v2347_v31  ;;  %786 = vmatpush.msrb.mxu2 %v2349_v33  ;;  %v838_v50 = vand.u32 4294901760, %v837_v44 }
 0x1e3   :  { %v822_v40 = vand.u32 4294901760, %v821_v7  ;;  %v834_v52 = vand.u32 4294901760, %v833_v47 }
 0x1e4   :  { %v827_v41 = vsub.f32 %v2347_v31, %v826_v36  ;;  %788 = vmatpush.msrb.mxu2 %v787_v38  ;;  %v839_v56 = vsub.f32 %v837_v44, %v838_v50 }
 0x1e6   :  { %v828_v46 = vand.u32 4294901760, %v827_v41  ;;  %790 = vmatpush.msrb.mxu2 %v789_v43  ;;  %v840_v60 = vand.u32 4294901760, %v839_v56 }
 0x1e8   :  { %792 = vmatpush.msrb.mxu2 %v791_v49 }
 0x1ea   :  { %794 = vmatpush.msrb.mxu2 %v793_v55 }
 0x255   :  { %v536_v61 = vpop.xlane.xlu0 %535 }
 0x256   :  { %v537_v62 = vmul.f32 %v536_v61, %v2282_v32  ;;  %v846_v61 = vand.u32 4294901760, %v845_v57 }
 0x258   :  { %v538_v63 = vadd.f32 1e-05, %v537_v62  ;;  %v851_v62 = vsub.f32 %v849_v54, %v850_v58 }
 0x25a   :  { %1992 = vrsqrt.f32 %v538_v63  ;;  %vm545_vm3 = vweird.f32 %v538_v63 }
 0x260   :  { %v1993_v0 = vpop.eup %1992 }
 0x261   :  { %v540_v1 = vmul.f32 %v1993_v0, %v538_v63  ;;  %vm546_vm2 = vweird.f32 %v1993_v0  ;;  %v856_v63 = vand.u32 4294901760, %v855_v59 }
 0x262   :  { %vm547_vm4 = vmor %vm545_vm3, %vm546_vm2 }
 0x263   :  { %v541_v2 = vmul.f32 %v1993_v0, %v540_v1  ;;  %v857_v1 = vsub.f32 %v855_v59, %v856_v63 }
 0x265   :  { %v542_v3 = vmul.f32 0.5, %v541_v2  ;;  %v858_v2 = vand.u32 4294901760, %v857_v1 }
 0x267   :  { %v543_v4 = vsub.f32 1.5, %v542_v3  ;;  %v1978_v3 = vld [vmem:[%s2589_s4] ss:$0 sm:$0xff] }
 0x269   :  { %v544_v5 = vmul.f32 %v1993_v0, %v543_v4 }
 0x26b   :  { %v548_v8 = vsel %vm547_vm4, %v1993_v0, %v544_v5  ;;  %v852_v0 = vand.u32 4294901760, %v851_v62 }
 0x26c   :  { %v549_v9 = vmul.f32 %v548_v8, %v2285_v35  ;;  %v816_v35 = vand.u32 4294901760, %v815_v29 }
 0x26e   :  { %v553_v11 = vmul.f32 %v1976_v6, %v549_v9  ;;  %817 = vmatpush.msrb.mxu3 %v816_v35 }
 0x270   :  { %v2310_v12 = vadd.f32 %v1977_v10, %v553_v11  ;;  %823 = vmatpush.msrb.mxu3 %v822_v40 }
 0x272   :  { %v567_v13 = vsel %vm133_vm0, %v2310_v12, 0  ;;  %829 = vmatpush.msrb.mxu3 %v828_v46  ;;  %v1064_v46 = vand.u32 4294901760, %v1044_v45 }
 0x273   :  { %v589_v14 = vand.u32 4294901760, %v567_v13 }
 0x274   :  { %835 = vmatpush.msrb.mxu3 %v834_v52  ;;  %v1094_v47 = vsub.f32 %v1044_v45, %v1064_v46 }
 0x275   :  { %635 = vmatmul.f32.vlgmr.msra.gmra.mxu1 %v589_v14  ;;  %v590_v15 = vsub.f32 %v567_v13, %v589_v14 }
 0x276   :  { %912 = vmatpush.msra.mxu1 %v2317_v20  ;;  %841 = vmatpush.msrb.mxu3 %v840_v60 }
 0x277   :  { %665 = vmatmul.f32.vlgmr.msra.gmra.mxu2 %v590_v15  ;;  %v591_v16 = vand.u32 4294901760, %v590_v15 }
 0x278   :  { %914 = vmatpush.msra.mxu1 %v2325_v23  ;;  %945 = vmatpush.msra.mxu2 %v814_v25  ;;  %v1979_v25 = vld [vmem:[%s2550_s10] ss:$0 sm:$0xff] }
 0x279   :  { %692 = vmatmul.f32.vlgmr.msra.gmra.mxu3 %v591_v16  ;;  %v592_v17 = vsub.f32 %v590_v15, %v591_v16 }
 0x27a   :  { %916 = vmatpush.msra.mxu1 %v2336_v27  ;;  %949 = vmatpush.msra.mxu2 %v820_v30 }
 0x27b   :  { %v593_v18 = vand.u32 4294901760, %v592_v17  ;;  %847 = vmatpush.msrb.mxu3 %v846_v61 }
 0x27c   :  { %918 = vmatpush.msra.mxu1 %v2349_v33  ;;  %953 = vmatpush.msra.mxu2 %v826_v36 }
 0x27d   :  { %594 = vmatmul.f32.vlgmr.msra.gmra.mxu0 %v593_v18  ;;  %750 = vmatmul.f32.vlgmr.msrb.gmra.mxu1 %v589_v14 }
 0x27e   :  { %875 = vmatpush.msra.mxu0 %v2323_v22  ;;  %920 = vmatpush.msra.mxu1 %v787_v38 }
 0x27f   :  { %853 = vmatpush.msrb.mxu3 %v852_v0  ;;  %957 = vmatpush.msra.mxu2 %v832_v42 }
 0x280   :  { %878 = vmatpush.msra.mxu0 %v2334_v26  ;;  %922 = vmatpush.msra.mxu1 %v789_v43 }
 0x281   :  { %859 = vmatpush.msrb.mxu3 %v858_v2  ;;  %961 = vmatpush.msra.mxu2 %v838_v50  ;;  %v1095_v50 = vand.u32 4294901760, %v1094_v47 }
 0x282   :  { %881 = vmatpush.msra.mxu0 %v2347_v31  ;;  %924 = vmatpush.msra.mxu1 %v791_v49 }
 0x283   :  { %988 = vmatpush.msra.mxu3 %v2317_v20  ;;  %965 = vmatpush.msra.mxu2 %v844_v53  ;;  %v1041_v53 = vld [vmem:[%s2553_s13] sm:$0xff] }
 0x284   :  { %884 = vmatpush.msra.mxu0 %v831_v37  ;;  %926 = vmatpush.msra.mxu1 %v793_v55  ;;  %v1070_v57 = vand.u32 4294901760, %v1041_v53 }
 0x285   :  { %725 = vmatmul.f32.vlgmr.msrb.gmra.mxu0 %v589_v14  ;;  %990 = vmatpush.msra.mxu3 %v2325_v23 }
 0x286   :  { %887 = vmatpush.msra.mxu0 %v837_v44  ;;  %969 = vmatpush.msra.mxu2 %v850_v58  ;;  %v1112_v61 = vsub.f32 %v1041_v53, %v1070_v57 }
 0x287   :  { %992 = vmatpush.msra.mxu3 %v2336_v27 }
 0x288   :  { %890 = vmatpush.msra.mxu0 %v843_v48  ;;  %973 = vmatpush.msra.mxu2 %v856_v63  ;;  %v1113_v0 = vand.u32 4294901760, %v1112_v61 }
 0x289   :  { %994 = vmatpush.msra.mxu3 %v2349_v33 }
 0x28a   :  { %893 = vmatpush.msra.mxu0 %v849_v54  ;;  %v1096_v54 = vsub.f32 %v1094_v47, %v1095_v50  ;;  %v1114_v2 = vsub.f32 %v1112_v61, %v1113_v0 }
 0x28b   :  { %996 = vmatpush.msra.mxu3 %v787_v38 }
 0x28c   :  { %896 = vmatpush.msra.mxu0 %v855_v59  ;;  %v1097_v58 = vand.u32 4294901760, %v1096_v54 }
 0x28d   :  { %998 = vmatpush.msra.mxu3 %v789_v43 }
 0x28e   :  { %1065 = vmatpush.msrb.mxu0 %v1064_v46  ;;  %1098 = vmatpush.msrb.mxu1 %v1097_v58 }
 0x28f   :  { %1000 = vmatpush.msra.mxu3 %v791_v49  ;;  %v1042_v49 = vld [vmem:[%s2553_s13 + $0x8] sm:$0xff] }
 0x290   :  { %v1068_v52 = vand.u32 4294901760, %v1042_v49 }
 0x291   :  { %1002 = vmatpush.msra.mxu3 %v793_v55 }
 0x292   :  { %v1106_v56 = vsub.f32 %v1042_v49, %v1068_v52 }
 0x294   :  { %v1107_v60 = vand.u32 4294901760, %v1106_v56 }
 0x296   :  { %v1108_v63 = vsub.f32 %v1106_v56, %v1107_v60 }
 0x298   :  { %v1109_v1 = vand.u32 4294901760, %v1108_v63 }
 0x2f2   :  { %v636_v4 = vpop.f32.mrf.mxu1 }
 0x2fa   :  { %v595_v5 = vpop.f32.mrf.mxu0  ;;  %v666_v9 = vpop.f32.mrf.mxu2 }
 0x2fb   :  { %v596_v6 = vadd.f32 %v1978_v3, %v595_v5  ;;  %v751_v16 = vpop.f32.mrf.mxu1  ;;  %v1115_v3 = vand.u32 4294901760, %v1114_v2 }
 0x2fc   :  { %v693_v11 = vpop.f32.mrf.mxu3 }
 0x2fd   :  { %v637_v8 = vadd.f32 %v636_v4, %v596_v6 }
 0x2ff   :  { %v667_v10 = vadd.f32 %v666_v9, %v637_v8 }
 0x301   :  { %v694_v13 = vadd.f32 %v693_v11, %v667_v10 }
 0x302   :  { %v726_v14 = vpop.f32.mrf.mxu0 }
 0x303   :  { %v727_v15 = vadd.f32 %v726_v14, %v694_v13 }
 0x305   :  { %v752_v17 = vadd.f32 %v751_v16, %v727_v15  ;;  %v1980_v15 = vld [vmem:[%s2551_s11] ss:$0 sm:$0xff] }
 0x307   :  { %v754_v18 = vmax.f32 %v752_v17, 0.0 }
 0x309   :  { %v769_v19 = vsel %vm767_vm5, %v754_v18, 0  ;;  %v1981_v18 = vld [vmem:[%s2552_s12] ss:$0 sm:$0xff] }
 0x30a   :  { %v795_v20 = vand.u32 4294901760, %v769_v19 }
 0x30c   :  { %v796_v21 = vsub.f32 %v769_v19, %v795_v20  ;;  %861 = vmatmul.f32.vlgmr.msrb.gmra.mxu3 %v795_v20 }
 0x30d   :  { %1225 = vmatpush.msrb.mxu3 %v1064_v46 }
 0x30e   :  { %899 = vmatmul.f32.vlgmr.msra.gmra.mxu0 %v796_v21  ;;  %v797_v22 = vand.u32 4294901760, %v796_v21 }
 0x310   :  { %930 = vmatmul.f32.vlgmr.msra.gmra.mxu1 %v797_v22  ;;  %v798_v23 = vsub.f32 %v796_v21, %v797_v22 }
 0x312   :  { %v799_v24 = vand.u32 4294901760, %v798_v23 }
 0x314   :  { %800 = vmatmul.f32.vlgmr.msrb.gmra.mxu2 %v799_v24  ;;  %1004 = vmatmul.f32.vlgmr.msra.gmra.mxu3 %v795_v20 }
 0x315   :  { %1194 = vmatpush.msrb.mxu2 %v1095_v50  ;;  %v1982_v50 = vld [vmem:[%s2554_s14] ss:$0 sm:$0xff] }
 0x31c   :  { %975 = vmatmul.f32.vlgmr.msra.gmra.mxu2 %v795_v20 }
 0x38b   :  { %v900_v30 = vpop.f32.mrf.mxu0 }
 0x38d   :  { %v931_v33 = vpop.f32.mrf.mxu1 }
 0x38f   :  { %v862_v26 = vpop.f32.mrf.mxu3 }
 0x397   :  { %v801_v27 = vpop.f32.mrf.mxu2  ;;  %v1005_v36 = vpop.f32.mrf.mxu3 }
 0x398   :  { %v802_v28 = vadd.f32 %v1979_v25, %v801_v27  ;;  %v1240_v27 = vld [vmem:[%s2555_s15 + $0x18] sm:$0xff] }
 0x39a   :  { %v863_v29 = vadd.f32 %v862_v26, %v802_v28  ;;  %v1260_v28 = vand.u32 4294901760, %v1240_v27 }
 0x39c   :  { %v901_v31 = vadd.f32 %v900_v30, %v863_v29  ;;  %v1239_v29 = vld [vmem:[%s2555_s15 + $0x10] sm:$0xff]  ;;  %v1290_v30 = vsub.f32 %v1240_v27, %v1260_v28 }
 0x39e   :  { %v932_v34 = vadd.f32 %v931_v33, %v901_v31  ;;  %v1262_v31 = vand.u32 4294901760, %v1239_v29  ;;  %v1238_v33 = vld [vmem:[%s2555_s15 + $0x8] sm:$0xff] }
 0x39f   :  { %v976_v35 = vpop.f32.mrf.mxu2 }
 0x3a0   :  { %v977_v7 = vadd.f32 %v976_v35, %v932_v34  ;;  %v1291_v34 = vand.u32 4294901760, %v1290_v30  ;;  %v1296_v35 = vsub.f32 %v1239_v29, %v1262_v31 }
 0x3a2   :  { %v1006_v37 = vadd.f32 %v1005_v36, %v977_v7  ;;  %v1264_v7 = vand.u32 4294901760, %v1238_v33  ;;  %v1237_v36 = vld [vmem:[%s2555_s15] sm:$0xff] }
 0x3a4   :  { %v1008_v38 = vadd.f32 %v1006_v37, %v2310_v12  ;;  %v1043_v12 = vld [vmem:[%s2553_s13 + $0x10] sm:$0xff]  ;;  %v1292_v37 = vsub.f32 %v1290_v30, %v1291_v34 }
 0x3a5   :  { %v1066_v48 = vand.u32 4294901760, %v1043_v12 }
 0x3a6   :  { %v1011_v39 = vsel %vm133_vm0, %v1008_v38, 0.0 }
 0x3a7   :  { %1012 = vadd.xlane.f32.xlu1 %v1011_v39  ;;  %v1100_v51 = vsub.f32 %v1043_v12, %v1066_v48  ;;  %1227 = vmatpush.msrb.mxu3 %v1066_v48  ;;  %v1302_v39 = vsub.f32 %v1238_v33, %v1264_v7 }
 0x3a8   :  { %1067 = vmatpush.msrb.mxu0 %v1066_v48 }
 0x3a9   :  { %v1101_v55 = vand.u32 4294901760, %v1100_v51  ;;  %1229 = vmatpush.msrb.mxu3 %v1068_v52 }
 0x3aa   :  { %1069 = vmatpush.msrb.mxu0 %v1068_v52 }
 0x3ab   :  { %v1102_v59 = vsub.f32 %v1100_v51, %v1101_v55  ;;  %1198 = vmatpush.msrb.mxu2 %v1101_v55  ;;  %1231 = vmatpush.msrb.mxu3 %v1070_v57 }
 0x3ac   :  { %1071 = vmatpush.msrb.mxu0 %v1070_v57 }
 0x3ad   :  { %v1103_v62 = vand.u32 4294901760, %v1102_v59  ;;  %1202 = vmatpush.msrb.mxu2 %v1107_v60  ;;  %1361 = vmatpush.msra.mxu3 %v1260_v28 }
 0x3ae   :  { %1136 = vmatpush.msra.mxu0 %v1094_v47 }
 0x3af   :  { %1104 = vmatpush.msrb.mxu1 %v1103_v62  ;;  %1206 = vmatpush.msrb.mxu2 %v1113_v0 }
 0x3b0   :  { %1139 = vmatpush.msra.mxu0 %v1100_v51  ;;  %1363 = vmatpush.msra.mxu3 %v1262_v31 }
 0x3b1   :  { %1110 = vmatpush.msrb.mxu1 %v1109_v1  ;;  %1332 = vmatpush.msra.mxu2 %v1290_v30  ;;  %v1468_v30 = vld [vmem:[#allocation7 + $0x10] sm:$0xff] }
 0x3b2   :  { %1142 = vmatpush.msra.mxu0 %v1106_v56  ;;  %1365 = vmatpush.msra.mxu3 %v1264_v7  ;;  %v1491_v33 = vand.u32 4294901760, %v1468_v30 }
 0x3b3   :  { %1116 = vmatpush.msrb.mxu1 %v1115_v3  ;;  %1335 = vmatpush.msra.mxu2 %v1296_v35 }
 0x3b4   :  { %1145 = vmatpush.msra.mxu0 %v1112_v61 }
 0x3b5   :  { %1165 = vmatpush.msra.mxu1 %v1064_v46  ;;  %1338 = vmatpush.msra.mxu2 %v1302_v39 }
 0x3b7   :  { %1167 = vmatpush.msra.mxu1 %v1066_v48 }
 0x3b9   :  { %1169 = vmatpush.msra.mxu1 %v1068_v52 }
 0x3bb   :  { %1171 = vmatpush.msra.mxu1 %v1070_v57 }
 0x41a   :  { %v1013_v40 = vpop.xlane.xlu1 %1012 }
 0x41b   :  { %v1014_v41 = vmul.f32 %v1013_v40, %v2282_v32  ;;  %v1266_v40 = vand.u32 4294901760, %v1237_v36 }
 0x41d   :  { %v2387_v42 = vsub.f32 %v1008_v38, %v1014_v41  ;;  %v1297_v38 = vand.u32 4294901760, %v1296_v35  ;;  %v1293_v41 = vand.u32 4294901760, %v1292_v37  ;;  %1367 = vmatpush.msra.mxu3 %v1266_v40 }
 0x41f   :  { %v1016_v43 = vmul.f32 %v2387_v42, %v2387_v42 }
 0x421   :  { %v1017_v44 = vsel %vm133_vm0, %v1016_v43, 0.0  ;;  %v1303_v43 = vand.u32 4294901760, %v1302_v39 }
 0x422   :  { %1018 = vadd.xlane.f32.xlu1 %v1017_v44  ;;  %v1308_v44 = vsub.f32 %v1237_v36, %v1266_v40  ;;  %v1466_v36 = vld [vmem:[#allocation7] sm:$0xff] }
 0x423   :  { %v1304_v46 = vsub.f32 %v1302_v39, %v1303_v43 }
 0x424   :  { %v1309_v12 = vand.u32 4294901760, %v1308_v44  ;;  %1341 = vmatpush.msra.mxu2 %v1308_v44 }
 0x425   :  { %v1305_v47 = vand.u32 4294901760, %v1304_v46 }
 0x426   :  { %v1310_v48 = vsub.f32 %v1308_v44, %v1309_v12 }
 0x428   :  { %v1311_v49 = vand.u32 4294901760, %v1310_v48 }
 0x495   :  { %v1019_v4 = vpop.xlane.xlu1 %1018 }
 0x496   :  { %v1020_v5 = vmul.f32 %v1019_v4, %v2282_v32 }
 0x498   :  { %v1021_v6 = vadd.f32 1e-05, %v1020_v5  ;;  %v1983_v5 = vld [vmem:[%s2556_s16] ss:$0 sm:$0xff]  ;;  %s2108_s16 = smov [#allocation8]  }
 0x499   :  { %s1954_s0 = sshll.u32 %s2108_s16, 4  ;;  %s1955_s0 = int_to_ptr.vmem [resolvable:$true] %s1954_s0 }
 0x49a   :  { %1994 = vrsqrt.f32 %v1021_v6  ;;  %vm1028_vm7 = vweird.f32 %v1021_v6 }
 0x4a0   :  { %v1995_v8 = vpop.eup %1994 }
 0x4a1   :  { %v1023_v9 = vmul.f32 %v1995_v8, %v1021_v6  ;;  %vm1029_vm6 = vweird.f32 %v1995_v8 }
 0x4a2   :  { %vm1030_vm8 = vmor %vm1028_vm7, %vm1029_vm6 }
 0x4a3   :  { %v1024_v10 = vmul.f32 %v1995_v8, %v1023_v9 }
 0x4a5   :  { %v1025_v11 = vmul.f32 0.5, %v1024_v10 }
 0x4a7   :  { %v1026_v13 = vsub.f32 1.5, %v1025_v11 }
 0x4a9   :  { %v1027_v14 = vmul.f32 %v1995_v8, %v1026_v13 }
 0x4ab   :  { %v1031_v16 = vsel %vm1030_vm8, %v1995_v8, %v1027_v14 }
 0x4ac   :  { %v1032_v17 = vmul.f32 %v1031_v16, %v2387_v42  ;;  %v1298_v42 = vsub.f32 %v1296_v35, %v1297_v38  ;;  %v1525_v35 = vsub.f32 %v1468_v30, %v1491_v33  ;;  %v1665_v30 = vld [vmem:[%s2561_s21 + $0x10] sm:$0xff] }
 0x4ae   :  { %v1036_v19 = vmul.f32 %v1980_v15, %v1032_v17  ;;  %v1299_v45 = vand.u32 4294901760, %v1298_v42 }
 0x4b0   :  { %v2412_v20 = vadd.f32 %v1981_v18, %v1036_v19 }
 0x4b2   :  { %v1050_v21 = vsel %vm133_vm0, %v2412_v20, 0 }
 0x4b3   :  { %v1072_v22 = vand.u32 4294901760, %v1050_v21 }
 0x4b5   :  { %v1073_v23 = vsub.f32 %v1050_v21, %v1072_v22  ;;  %1118 = vmatmul.f32.vlgmr.msrb.gmra.mxu1 %v1072_v22  ;;  %1208 = vmatmul.f32.vlgmr.msrb.gmra.mxu2 %v1072_v22 }
 0x4b6   :  { %1233 = vmatmul.f32.vlgmr.msrb.gmra.mxu3 %v1072_v22  ;;  %1294 = vmatpush.msrb.mxu1 %v1293_v41 }
 0x4b7   :  { %v1074_v24 = vand.u32 4294901760, %v1073_v23 }
 0x4b8   :  { %1300 = vmatpush.msrb.mxu1 %v1299_v45 }
 0x4b9   :  { %v1075_v25 = vsub.f32 %v1073_v23, %v1074_v24 }
 0x4ba   :  { %1306 = vmatpush.msrb.mxu1 %v1305_v47 }
 0x4bb   :  { %v1076_v26 = vand.u32 4294901760, %v1075_v25 }
 0x4bc   :  { %1312 = vmatpush.msrb.mxu1 %v1311_v49 }
 0x4bd   :  { %1077 = vmatmul.f32.vlgmr.msrb.gmra.mxu0 %v1076_v26  ;;  %1175 = vmatmul.f32.vlgmr.msra.gmra.mxu1 %v1074_v24 }
 0x4be   :  { %1261 = vmatpush.msrb.mxu0 %v1260_v28  ;;  %1421 = vmatpush.msra.mxu1 %v1260_v28  ;;  %v1469_v28 = vld [vmem:[#allocation7 + $0x18] sm:$0xff] }
 0x4bf   :  { %v1489_v29 = vand.u32 4294901760, %v1469_v28 }
 0x4c0   :  { %1263 = vmatpush.msrb.mxu0 %v1262_v31  ;;  %1423 = vmatpush.msra.mxu1 %v1262_v31 }
 0x4c1   :  { %v1519_v31 = vsub.f32 %v1469_v28, %v1489_v29  ;;  %1490 = vmatpush.msrb.mxu2 %v1489_v29 }
 0x4c2   :  { %1265 = vmatpush.msrb.mxu0 %v1264_v7  ;;  %1425 = vmatpush.msra.mxu1 %v1264_v7 }
 0x4c3   :  { %1492 = vmatpush.msrb.mxu2 %v1491_v33 }
 0x4c4   :  { %1267 = vmatpush.msrb.mxu0 %v1266_v40  ;;  %1427 = vmatpush.msra.mxu1 %v1266_v40  ;;  %v1495_v40 = vand.u32 4294901760, %v1466_v36 }
 0x4c5   :  { %1148 = vmatmul.f32.vlgmr.msra.gmra.mxu0 %v1073_v23 }
 0x4c6   :  { %1390 = vmatpush.msra.mxu0 %v1291_v34  ;;  %v1520_v34 = vand.u32 4294901760, %v1519_v31  ;;  %v1537_v44 = vsub.f32 %v1466_v36, %v1495_v40 }
 0x4c8   :  { %1394 = vmatpush.msra.mxu0 %v1297_v38  ;;  %v1521_v37 = vsub.f32 %v1519_v31, %v1520_v34  ;;  %v1526_v38 = vand.u32 4294901760, %v1525_v35 }
 0x4ca   :  { %1398 = vmatpush.msra.mxu0 %v1303_v43  ;;  %v1522_v41 = vand.u32 4294901760, %v1521_v37  ;;  %v1527_v42 = vsub.f32 %v1525_v35, %v1526_v38 }
 0x4cc   :  { %1402 = vmatpush.msra.mxu0 %v1309_v12  ;;  %1523 = vmatpush.msrb.mxu3 %v1522_v41  ;;  %v1528_v45 = vand.u32 4294901760, %v1527_v42  ;;  %v1538_v12 = vand.u32 4294901760, %v1537_v44  ;;  %v1663_v41 = vld [vmem:[%s2561_s21] sm:$0xff] }
 0x4ce   :  { %1529 = vmatpush.msrb.mxu3 %v1528_v45  ;;  %v1539_v48 = vsub.f32 %v1537_v44, %v1538_v12  ;;  %v1700_v45 = vand.u32 4294901760, %v1663_v41 }
 0x4d0   :  { %v1540_v49 = vand.u32 4294901760, %v1539_v48  ;;  %v1762_v48 = vsub.f32 %v1663_v41, %v1700_v45 }
 0x532   :  { %v1119_v51 = vpop.f32.mrf.mxu1 }
 0x538   :  { %v1209_v59 = vpop.f32.mrf.mxu2 }
 0x539   :  { %v1234_v61 = vpop.f32.mrf.mxu3 }
 0x53a   :  { %v1078_v52 = vpop.f32.mrf.mxu0  ;;  %v1176_v57 = vpop.f32.mrf.mxu1 }
 0x53b   :  { %v1079_v53 = vadd.f32 %v1982_v50, %v1078_v52 }
 0x53d   :  { %v1120_v54 = vadd.f32 %v1119_v51, %v1079_v53 }
 0x542   :  { %v1149_v55 = vpop.f32.mrf.mxu0 }
 0x543   :  { %v1150_v56 = vadd.f32 %v1149_v55, %v1120_v54 }
 0x545   :  { %v1177_v58 = vadd.f32 %v1176_v57, %v1150_v56 }
 0x547   :  { %v1210_v60 = vadd.f32 %v1209_v59, %v1177_v58  ;;  %v1984_v59 = vld [vmem:[%s2557_s17] ss:$0 sm:$0xff]  ;;  %s1956_s17 = sshll.u32 %s2565_s25, 4  ;;  %s1957_s17 = int_to_ptr.hbm [resolvable:$true] %s1956_s17 }
 0x549   :  { %v1235_v62 = vadd.f32 %v1234_v61, %v1210_v60 }
 0x54b   :  { %v1246_v63 = vsel %vm133_vm0, %v1235_v62, 0  ;;  %v1985_v62 = vld [vmem:[%s2558_s18] ss:$0 sm:$0xff] }
 0x54c   :  { %v1268_v0 = vand.u32 4294901760, %v1246_v63 }
 0x54e   :  { %1314 = vmatmul.f32.vlgmr.msrb.gmra.mxu1 %v1268_v0  ;;  %v1269_v1 = vsub.f32 %v1246_v63, %v1268_v0 }
 0x54f   :  { %1590 = vmatpush.msrb.mxu1 %v1489_v29 }
 0x550   :  { %1344 = vmatmul.f32.vlgmr.msra.gmra.mxu2 %v1269_v1  ;;  %v1270_v2 = vand.u32 4294901760, %v1269_v1 }
 0x551   :  { %1592 = vmatpush.msrb.mxu1 %v1491_v33 }
 0x552   :  { %1371 = vmatmul.f32.vlgmr.msra.gmra.mxu3 %v1270_v2  ;;  %v1271_v3 = vsub.f32 %v1269_v1, %v1270_v2 }
 0x554   :  { %v1272_v4 = vand.u32 4294901760, %v1271_v3 }
 0x556   :  { %1273 = vmatmul.f32.vlgmr.msrb.gmra.mxu0 %v1272_v4  ;;  %1429 = vmatmul.f32.vlgmr.msra.gmra.mxu1 %v1268_v0 }
 0x557   :  { %1561 = vmatpush.msrb.mxu0 %v1519_v31 }
 0x559   :  { %1564 = vmatpush.msrb.mxu0 %v1525_v35 }
 0x55e   :  { %1404 = vmatmul.f32.vlgmr.msra.gmra.mxu0 %v1268_v0 }
 0x5cb   :  { %v1315_v6 = vpop.f32.mrf.mxu1 }
 0x5d3   :  { %v1274_v8 = vpop.f32.mrf.mxu0  ;;  %v1345_v11 = vpop.f32.mrf.mxu2 }
 0x5d4   :  { %v1275_v9 = vadd.f32 %v1983_v5, %v1274_v8  ;;  %v1430_v18 = vpop.f32.mrf.mxu1  ;;  %v1670_v8 = vld [vmem:[%s2561_s21 + $0x38] sm:$0xff] }
 0x5d5   :  { %v1372_v14 = vpop.f32.mrf.mxu3 }
 0x5d6   :  { %v1316_v10 = vadd.f32 %v1315_v6, %v1275_v9  ;;  %v2458_v9 = vand.u32 4294901760, %v1670_v8 }
 0x5d8   :  { %v1346_v13 = vadd.f32 %v1345_v11, %v1316_v10  ;;  %v1669_v10 = vld [vmem:[%s2561_s21 + $0x30] sm:$0xff]  ;;  %v2464_v11 = vsub.f32 %v1670_v8, %v2458_v9 }
 0x5da   :  { %v1373_v15 = vadd.f32 %v1372_v14, %v1346_v13  ;;  %v2466_v13 = vand.u32 4294901760, %v1669_v10  ;;  %v1668_v14 = vld [vmem:[%s2561_s21 + $0x28] sm:$0xff] }
 0x5db   :  { %v1405_v16 = vpop.f32.mrf.mxu0 }
 0x5dc   :  { %v1406_v17 = vadd.f32 %v1405_v16, %v1373_v15  ;;  %v1721_v15 = vand.u32 4294901760, %v2464_v11  ;;  %v2475_v16 = vsub.f32 %v1669_v10, %v2466_v13 }
 0x5de   :  { %v1431_v19 = vadd.f32 %v1430_v18, %v1406_v17  ;;  %v2477_v17 = vand.u32 4294901760, %v1668_v14  ;;  %v1667_v18 = vld [vmem:[%s2561_s21 + $0x20] sm:$0xff] }
 0x5e0   :  { %v1433_v21 = vadd.f32 %v1431_v19, %v2412_v20  ;;  %v1467_v20 = vld [vmem:[#allocation7 + $0x8] sm:$0xff]  ;;  %v1722_v19 = vsub.f32 %v2464_v11, %v1721_v15 }
 0x5e1   :  { %v1493_v7 = vand.u32 4294901760, %v1467_v20 }
 0x5e2   :  { %v1436_v22 = vsel %vm133_vm0, %v1433_v21, 0.0 }
 0x5e3   :  { %1437 = vadd.xlane.f32.xlu2 %v1436_v22  ;;  %v1531_v39 = vsub.f32 %v1467_v20, %v1493_v7  ;;  %1594 = vmatpush.msrb.mxu1 %v1493_v7  ;;  %v2488_v22 = vsub.f32 %v1668_v14, %v2477_v17 }
 0x5e4   :  { %1494 = vmatpush.msrb.mxu2 %v1493_v7 }
 0x5e5   :  { %v1532_v43 = vand.u32 4294901760, %v1531_v39  ;;  %1567 = vmatpush.msrb.mxu0 %v1531_v39  ;;  %1596 = vmatpush.msrb.mxu1 %v1495_v40 }
 0x5e6   :  { %1496 = vmatpush.msrb.mxu2 %v1495_v40 }
 0x5e7   :  { %v1533_v46 = vsub.f32 %v1531_v39, %v1532_v43  ;;  %1570 = vmatpush.msrb.mxu0 %v1537_v44 }
 0x5e8   :  { %1619 = vmatpush.msra.mxu2 %v1520_v34  ;;  %v1696_v34 = vand.u32 4294901760, %v1665_v30 }
 0x5e9   :  { %v1534_v47 = vand.u32 4294901760, %v1533_v46  ;;  %1687 = vmatpush.msra.mxu0 %v2458_v9 }
 0x5ea   :  { %1623 = vmatpush.msra.mxu2 %v1526_v38  ;;  %v1750_v38 = vsub.f32 %v1665_v30, %v1696_v34 }
 0x5eb   :  { %1535 = vmatpush.msrb.mxu3 %v1534_v47  ;;  %1689 = vmatpush.msra.mxu0 %v2466_v13 }
 0x5ec   :  { %1627 = vmatpush.msra.mxu2 %v1532_v43  ;;  %v1751_v43 = vand.u32 4294901760, %v1750_v38 }
 0x5ed   :  { %1541 = vmatpush.msrb.mxu3 %v1540_v49  ;;  %1691 = vmatpush.msra.mxu0 %v2477_v17 }
 0x5ee   :  { %1631 = vmatpush.msra.mxu2 %v1538_v12  ;;  %v1752_v12 = vsub.f32 %v1750_v38, %v1751_v43 }
 0x5ef   :  { %1650 = vmatpush.msra.mxu3 %v1489_v29 }
 0x5f1   :  { %1652 = vmatpush.msra.mxu3 %v1491_v33 }
 0x5f3   :  { %1654 = vmatpush.msra.mxu3 %v1493_v7  ;;  %v1664_v7 = vld [vmem:[%s2561_s21 + $0x8] sm:$0xff] }
 0x5f4   :  { %v1698_v39 = vand.u32 4294901760, %v1664_v7 }
 0x5f5   :  { %1656 = vmatpush.msra.mxu3 %v1495_v40 }
 0x5f6   :  { %v1756_v44 = vsub.f32 %v1664_v7, %v1698_v39 }
 0x5f8   :  { %v1757_v47 = vand.u32 4294901760, %v1756_v44 }
 0x656   :  { %v1438_v23 = vpop.xlane.xlu2 %1437 }
 0x657   :  { %v1439_v24 = vmul.f32 %v1438_v23, %v2282_v32  ;;  %v2490_v23 = vand.u32 4294901760, %v1667_v18 }
 0x659   :  { %v2438_v25 = vsub.f32 %v1433_v21, %v1439_v24  ;;  %v1727_v21 = vand.u32 4294901760, %v2475_v16  ;;  %v1666_v24 = vld [vmem:[%s2561_s21 + $0x18] sm:$0xff]  ;;  %v1738_v28 = vsub.f32 %v1667_v18, %v2490_v23  ;;  %1693 = vmatpush.msra.mxu0 %v2490_v23 }
 0x65a   :  { %v1694_v29 = vand.u32 4294901760, %v1666_v24 }
 0x65b   :  { %v1441_v26 = vmul.f32 %v2438_v25, %v2438_v25  ;;  %v1739_v20 = vand.u32 4294901760, %v1738_v28 }
 0x65c   :  { %v1744_v35 = vsub.f32 %v1666_v24, %v1694_v29  ;;  %1695 = vmatpush.msra.mxu0 %v1694_v29 }
 0x65d   :  { %v1442_v27 = vsel %vm133_vm0, %v1441_v26, 0.0  ;;  %v1728_v26 = vsub.f32 %v2475_v16, %v1727_v21  ;;  %v1740_v37 = vsub.f32 %v1738_v28, %v1739_v20 }
 0x65e   :  { %1443 = vadd.xlane.f32.xlu2 %v1442_v27  ;;  %v1733_v27 = vand.u32 4294901760, %v2488_v22  ;;  %v1745_v40 = vand.u32 4294901760, %v1744_v35  ;;  %1697 = vmatpush.msra.mxu0 %v1696_v34 }
 0x65f   :  { %v1729_v31 = vand.u32 4294901760, %v1728_v26  ;;  %v1741_v42 = vand.u32 4294901760, %v1740_v37 }
 0x660   :  { %v1734_v33 = vsub.f32 %v2488_v22, %v1733_v27  ;;  %v1746_v46 = vsub.f32 %v1744_v35, %v1745_v40  ;;  %1699 = vmatpush.msra.mxu0 %v1698_v39 }
 0x662   :  { %v1735_v36 = vand.u32 4294901760, %v1734_v33  ;;  %v1747_v49 = vand.u32 4294901760, %v1746_v46  ;;  %1701 = vmatpush.msra.mxu0 %v1700_v45 }
 0x6d1   :  { %v1444_v50 = vpop.xlane.xlu2 %1443 }
 0x6d2   :  { %v1445_v51 = vmul.f32 %v1444_v50, %v2282_v32  ;;  %v1753_v50 = vand.u32 4294901760, %v1752_v12 }
 0x6d4   :  { %v1446_v52 = vadd.f32 1e-05, %v1445_v51  ;;  %v1758_v51 = vsub.f32 %v1756_v44, %v1757_v47 }
 0x6d6   :  { %1996 = vrsqrt.f32 %v1446_v52  ;;  %vm1453_vm10 = vweird.f32 %v1446_v52 }
 0x6dc   :  { %v1997_v53 = vpop.eup %1996 }
 0x6dd   :  { %v1448_v54 = vmul.f32 %v1997_v53, %v1446_v52  ;;  %vm1454_vm9 = vweird.f32 %v1997_v53  ;;  %v1763_v52 = vand.u32 4294901760, %v1762_v48 }
 0x6de   :  { %vm1455_vm11 = vmor %vm1453_vm10, %vm1454_vm9 }
 0x6df   :  { %v1449_v55 = vmul.f32 %v1997_v53, %v1448_v54  ;;  %v1764_v54 = vsub.f32 %v1762_v48, %v1763_v52 }
 0x6e1   :  { %v1450_v56 = vmul.f32 0.5, %v1449_v55  ;;  %v1765_v55 = vand.u32 4294901760, %v1764_v54 }
 0x6e3   :  { %v1451_v57 = vsub.f32 1.5, %v1450_v56  ;;  %v1986_v56 = vld [vmem:[%s2560_s20] ss:$0 sm:$0xff] }
 0x6e5   :  { %v1452_v58 = vmul.f32 %v1997_v53, %v1451_v57 }
 0x6e7   :  { %v1456_v60 = vsel %vm1455_vm11, %v1997_v53, %v1452_v58  ;;  %v1759_v53 = vand.u32 4294901760, %v1758_v51 }
 0x6e8   :  { %v1457_v61 = vmul.f32 %v1456_v60, %v2438_v25  ;;  %v1723_v25 = vand.u32 4294901760, %v1722_v19 }
 0x6ea   :  { %v1461_v63 = vmul.f32 %v1984_v59, %v1457_v61  ;;  %1724 = vmatpush.msra.mxu1 %v1723_v25 }
 0x6ec   :  { %v2451_v0 = vadd.f32 %v1985_v62, %v1461_v63  ;;  %1730 = vmatpush.msra.mxu1 %v1729_v31 }
 0x6ee   :  { %v1475_v1 = vsel %vm133_vm0, %v2451_v0, 0  ;;  %1736 = vmatpush.msra.mxu1 %v1735_v36 }
 0x6ef   :  { %v1497_v2 = vand.u32 4294901760, %v1475_v1 }
 0x6f0   :  { %1742 = vmatpush.msra.mxu1 %v1741_v42 }
 0x6f1   :  { %1543 = vmatmul.f32.vlgmr.msrb.gmra.mxu3 %v1497_v2  ;;  %v1498_v3 = vsub.f32 %v1475_v1, %v1497_v2 }
 0x6f2   :  { %1819 = vmatpush.msrb.mxu3 %v2458_v9  ;;  %1748 = vmatpush.msra.mxu1 %v1747_v49 }
 0x6f3   :  { %1573 = vmatmul.f32.vlgmr.msrb.gmra.mxu0 %v1498_v3  ;;  %v1499_v4 = vand.u32 4294901760, %v1498_v3 }
 0x6f4   :  { %1821 = vmatpush.msrb.mxu3 %v2466_v13  ;;  %1852 = vmatpush.msrb.mxu0 %v1721_v15  ;;  %v1987_v15 = vld [vmem:[%s2562_s22] ss:$0 sm:$0xff] }
 0x6f5   :  { %1600 = vmatmul.f32.vlgmr.msrb.gmra.mxu1 %v1499_v4  ;;  %v1500_v5 = vsub.f32 %v1498_v3, %v1499_v4 }
 0x6f6   :  { %1823 = vmatpush.msrb.mxu3 %v2477_v17  ;;  %1856 = vmatpush.msrb.mxu0 %v1727_v21 }
 0x6f7   :  { %v1501_v6 = vand.u32 4294901760, %v1500_v5  ;;  %1754 = vmatpush.msra.mxu1 %v1753_v50 }
 0x6f8   :  { %1825 = vmatpush.msrb.mxu3 %v2490_v23  ;;  %1860 = vmatpush.msrb.mxu0 %v1733_v27 }
 0x6f9   :  { %1502 = vmatmul.f32.vlgmr.msrb.gmra.mxu2 %v1501_v6  ;;  %1658 = vmatmul.f32.vlgmr.msra.gmra.mxu3 %v1497_v2 }
 0x6fa   :  { %1782 = vmatpush.msrb.mxu2 %v2464_v11  ;;  %1827 = vmatpush.msrb.mxu3 %v1694_v29 }
 0x6fb   :  { %1760 = vmatpush.msra.mxu1 %v1759_v53  ;;  %1864 = vmatpush.msrb.mxu0 %v1739_v20 }
 0x6fc   :  { %1785 = vmatpush.msrb.mxu2 %v2475_v16  ;;  %1829 = vmatpush.msrb.mxu3 %v1696_v34 }
 0x6fd   :  { %1766 = vmatpush.msra.mxu1 %v1765_v55  ;;  %1868 = vmatpush.msrb.mxu0 %v1745_v40 }
 0x6fe   :  { %1788 = vmatpush.msrb.mxu2 %v2488_v22  ;;  %1831 = vmatpush.msrb.mxu3 %v1698_v39 }
 0x6ff   :  { %1895 = vmatpush.msrb.mxu1 %v2458_v9  ;;  %1872 = vmatpush.msrb.mxu0 %v1751_v43  ;;  %v1988_v43 = vld [vmem:[%s2563_s23] ss:$0 sm:$0xff] }
 0x700   :  { %1791 = vmatpush.msrb.mxu2 %v1738_v28  ;;  %1833 = vmatpush.msrb.mxu3 %v1700_v45 }
 0x701   :  { %1633 = vmatmul.f32.vlgmr.msra.gmra.mxu2 %v1497_v2  ;;  %1897 = vmatpush.msrb.mxu1 %v2466_v13 }
 0x702   :  { %1794 = vmatpush.msrb.mxu2 %v1744_v35  ;;  %1876 = vmatpush.msrb.mxu0 %v1757_v47 }
 0x703   :  { %1899 = vmatpush.msrb.mxu1 %v2477_v17 }
 0x704   :  { %1797 = vmatpush.msrb.mxu2 %v1750_v38  ;;  %1880 = vmatpush.msrb.mxu0 %v1763_v52 }
 0x705   :  { %1901 = vmatpush.msrb.mxu1 %v2490_v23 }
 0x706   :  { %1800 = vmatpush.msrb.mxu2 %v1756_v44 }
 0x707   :  { %1903 = vmatpush.msrb.mxu1 %v1694_v29 }
 0x708   :  { %1803 = vmatpush.msrb.mxu2 %v1762_v48 }
 0x709   :  { %1905 = vmatpush.msrb.mxu1 %v1696_v34 }
 0x70b   :  { %1907 = vmatpush.msrb.mxu1 %v1698_v39 }
 0x70d   :  { %1909 = vmatpush.msrb.mxu1 %v1700_v45 }
 0x770   :  { %v1574_v61 = vpop.f32.mrf.mxu0 }
 0x772   :  { %v1601_v63 = vpop.f32.mrf.mxu1 }
 0x774   :  { %v1544_v57 = vpop.f32.mrf.mxu3 }
 0x77c   :  { %v1503_v58 = vpop.f32.mrf.mxu2  ;;  %v1659_v4 = vpop.f32.mrf.mxu3 }
 0x77d   :  { %v1504_v59 = vadd.f32 %v1986_v56, %v1503_v58 }
 0x77f   :  { %v1545_v60 = vadd.f32 %v1544_v57, %v1504_v59 }
 0x781   :  { %v1575_v62 = vadd.f32 %v1574_v61, %v1545_v60 }
 0x783   :  { %v1602_v1 = vadd.f32 %v1601_v63, %v1575_v62 }
 0x784   :  { %v1634_v2 = vpop.f32.mrf.mxu2 }
 0x785   :  { %v1635_v3 = vadd.f32 %v1634_v2, %v1602_v1 }
 0x787   :  { %v1660_v5 = vadd.f32 %v1659_v4, %v1635_v3 }
 0x789   :  { %v1662_v6 = vmax.f32 %v1660_v5, 0.0 }
 0x78b   :  { %v1676_v8 = vsel %vm767_vm5, %v1662_v6, 0 }
 0x78c   :  { %v1702_v9 = vand.u32 4294901760, %v1676_v8 }
 0x78e   :  { %v1703_v10 = vsub.f32 %v1676_v8, %v1702_v9  ;;  %1768 = vmatmul.f32.vlgmr.msra.gmra.mxu1 %v1702_v9 }
 0x790   :  { %1806 = vmatmul.f32.vlgmr.msrb.gmra.mxu2 %v1703_v10  ;;  %v1704_v11 = vand.u32 4294901760, %v1703_v10 }
 0x792   :  { %1837 = vmatmul.f32.vlgmr.msrb.gmra.mxu3 %v1704_v11  ;;  %v1705_v13 = vsub.f32 %v1703_v10, %v1704_v11 }
 0x794   :  { %v1706_v14 = vand.u32 4294901760, %v1705_v13 }
 0x796   :  { %1707 = vmatmul.f32.vlgmr.msra.gmra.mxu0 %v1706_v14  ;;  %1911 = vmatmul.f32.vlgmr.msrb.gmra.mxu1 %v1702_v9 }
 0x79e   :  { %1882 = vmatmul.f32.vlgmr.msrb.gmra.mxu0 %v1702_v9 }
 0x80b   :  { %v1769_v16 = vpop.f32.mrf.mxu1 }
 0x813   :  { %v1708_v17 = vpop.f32.mrf.mxu0  ;;  %v1807_v21 = vpop.f32.mrf.mxu2 }
 0x814   :  { %v1709_v18 = vadd.f32 %v1987_v15, %v1708_v17  ;;  %v1912_v27 = vpop.f32.mrf.mxu1 }
 0x815   :  { %v1838_v23 = vpop.f32.mrf.mxu3 }
 0x816   :  { %v1770_v19 = vadd.f32 %v1769_v16, %v1709_v18 }
 0x818   :  { %v1808_v22 = vadd.f32 %v1807_v21, %v1770_v19 }
 0x81a   :  { %v1839_v24 = vadd.f32 %v1838_v23, %v1808_v22 }
 0x81b   :  { %v1883_v25 = vpop.f32.mrf.mxu0 }
 0x81c   :  { %v1884_v26 = vadd.f32 %v1883_v25, %v1839_v24 }
 0x81e   :  { %v1913_v28 = vadd.f32 %v1912_v27, %v1884_v26 }
 0x820   :  { %v1915_v29 = vadd.f32 %v1913_v28, %v2451_v0 }
 0x822   :  { %v1918_v30 = vsel %vm133_vm0, %v1915_v29, 0.0 }
 0x823   :  { %1919 = vadd.xlane.f32.xlu0 %v1918_v30 }
 0x896   :  { %v1920_v31 = vpop.xlane.xlu0 %1919 }
 0x897   :  { %v1921_v33 = vmul.f32 %v1920_v31, %v2282_v32 }
 0x899   :  { %v1922_v20 = vsub.f32 %v1915_v29, %v1921_v33 }
 0x89b   :  { %v1923_v34 = vmul.f32 %v1922_v20, %v1922_v20 }
 0x89d   :  { %v1924_v35 = vsel %vm133_vm0, %v1923_v34, 0.0 }
 0x89e   :  { %1925 = vadd.xlane.f32.xlu1 %v1924_v35 }
 0x911   :  { %v1926_v7 = vpop.xlane.xlu1 %1925 }
 0x912   :  { %v1927_v36 = vmul.f32 %v1926_v7, %v2282_v32  ;;  %v1989_v32 = vld [vmem:[%s2564_s24] ss:$0 sm:$0xff] }
 0x914   :  { %v1928_v37 = vadd.f32 1e-05, %v1927_v36 }
 0x916   :  { %1998 = vrsqrt.f32 %v1928_v37  ;;  %vm1935_vm13 = vweird.f32 %v1928_v37 }
 0x91c   :  { %v1999_v38 = vpop.eup %1998 }
 0x91d   :  { %v1930_v39 = vmul.f32 %v1999_v38, %v1928_v37  ;;  %vm1936_vm12 = vweird.f32 %v1999_v38 }
 0x91e   :  { %vm1937_vm14 = vmor %vm1935_vm13, %vm1936_vm12 }
 0x91f   :  { %v1931_v40 = vmul.f32 %v1999_v38, %v1930_v39 }
 0x921   :  { %v1932_v0 = vmul.f32 0.5, %v1931_v40 }
 0x923   :  { %v1933_v41 = vsub.f32 1.5, %v1932_v0 }
 0x925   :  { %v1934_v42 = vmul.f32 %v1999_v38, %v1933_v41 }
 0x927   :  { %v1938_v44 = vsel %vm1937_vm14, %v1999_v38, %v1934_v42 }
 0x928   :  { %v1939_v45 = vmul.f32 %v1938_v44, %v1922_v20 }
 0x92a   :  { %v1943_v46 = vmul.f32 %v1988_v43, %v1939_v45 }
 0x92c   :  { %v1947_v12 = vadd.f32 %v1989_v32, %v1943_v46 }
 0x92e   :  { %1948 = vst.msk [vmem:[#allocation8] sm:$0xff] %vm133_vm0, %v1947_v12 }
 0x92f   :  { %1959 = dma.vmem_to_hbm [thread:$0]  %s1955_s0, 128, %s1957_s17, [#allocation4]  }
 0x930   :  { %2100 = dma.done.wait [#allocation4], 128  }
 0x931   :  { %2101 = vsyncadd [#allocation4], 4294967168 }
 0x932   :  { %1964 = vsyncpa [#allocation3], 1 }
 0x933   :  { %1965 = vsyncpa [#allocation6], 1 }
 0x934   :  { %1966 = vsyncpa [#allocation4], 1 }

</bundles_post_ra>
